<compile_context>
chip_gen: v6e
topology: v6e:2x2x1
jax: 0.10.0
libtpu: 0.0.40
codegen_flags: <defaults>
</compile_context>

<pallas_src>
import numpy as np
import jax
import jax.numpy as jnp
from jax.experimental import pallas as pl
from jax.experimental.pallas import tpu as pltpu


# ----------------------------------------------------------------------------
# Fused Pallas kernel
# ----------------------------------------------------------------------------
def cnn_critic2_kernel(p_ref, w1_ref, w2t_ref, bn_ref, m2_ref,
                       w1s_ref, w2p_ref, b_ref, out_ref, pm_ref):
    """Whole CNN_Critic2 forward; every intermediate lives in VMEM / vregs.

    p_ref   : (4*R1, 128) conv1 im2col patches, 4 maxpool-tap blocks of R1 rows
              (rows 0..B*25-1 of each block are real, rest zero pad).
    w1_ref  : (128, 32)   conv1 weight (Cin*KH*KW, Cout).
    w2t_ref : (9, 32, 32) conv2 per-tap weights (Cin, Cout).
    bn_ref  : (4, 32)     [gamma1, beta1, gamma2, beta2].
    m2_ref  : (R1, 1)     conv2 valid-row mask (1.0 on the 9*B real rows).
    w1s_ref : (4, 32, 128) linear1 weight per spatial position, hidden padded.
    w2p_ref : (128, 128)  linear2 weight, zero padded.
    b_ref   : (2, 128)    [linear1 bias padded, linear2 bias padded].
    out_ref : (B, 128)    padded logits (first action_space columns are real).
    pm_ref  : (R1, 32)    VMEM scratch holding the pool2 output.
    """
    B = out_ref.shape[0]
    R1 = pm_ref.shape[0]
    n1 = float(4 * B * 25)           # conv1 output count per channel (N*H*W)
    n_pad1 = 4 * R1 - 4 * B * 25     # zero pad rows in the conv1 tap blocks
    n2 = float(9 * B)                # conv2 output count per channel
    eps = 1e-5

    # ---- conv1 (k=4, s=2): ONE fused matmul over all 4 maxpool taps --------
    t1 = jnp.dot(p_ref[...], w1_ref[...],
                 preferred_element_type=jnp.float32)             # (4*R1, 32)

    # Training-mode BN1 (biased var) -- two-pass; pad rows are exactly zero so
    # they add 0 to the sum and a known n_pad1 * mean^2 to the squared dev.
    mean1 = jnp.sum(t1, axis=0, keepdims=True) * (1.0 / n1)
    d1 = t1 - mean1
    var1 = (jnp.sum(d1 * d1, axis=0, keepdims=True)
            - n_pad1 * mean1 * mean1) * (1.0 / n1)
    scale1 = bn_ref[0:1, :] * jax.lax.rsqrt(jnp.maximum(var1, 0.0) + eps)
    shift1 = bn_ref[1:2, :] - mean1 * scale1
    a1 = jnp.maximum(t1 * scale1 + shift1, 0.0)                  # BN + ReLU

    # MaxPool2d(2): 4-way max across sublane-aligned tap blocks.
    pool1 = jnp.maximum(jnp.maximum(a1[0:R1], a1[R1:2 * R1]),
                        jnp.maximum(a1[2 * R1:3 * R1], a1[3 * R1:4 * R1]))  # (R1, 32)

    # ---- conv2 (k=3, s=1): 9 batch-wide roll-and-accumulate matmuls --------
    # Valid output rows q = b*25 + qy*5 + qx (qy,qx < 3) read pool1[q + ki*5+kj],
    # which never crosses a batch block nor touches pad rows.
    z = jnp.dot(pool1, w2t_ref[0], preferred_element_type=jnp.float32)
    for t in range(1, 9):
        s = (t // 3) * 5 + (t % 3)
        rolled = pltpu.roll(pool1, R1 - s, axis=0)   # == rows shifted up by s
        z = z + jnp.dot(rolled, w2t_ref[t], preferred_element_type=jnp.float32)

    # Training-mode BN2 over the 9*B valid rows only (two-pass, masked).
    mask2 = m2_ref[...]                                           # (R1, 1)
    mean2 = jnp.sum(z * mask2, axis=0, keepdims=True) * (1.0 / n2)
    d2 = (z - mean2) * mask2
    var2 = jnp.sum(d2 * d2, axis=0, keepdims=True) * (1.0 / n2)
    scale2 = bn_ref[2:3, :] * jax.lax.rsqrt(jnp.maximum(var2, 0.0) + eps)
    shift2 = bn_ref[3:4, :] - mean2 * scale2
    a2 = jnp.maximum(z * scale2 + shift2, 0.0)                    # (R1, 32)

    # ---- MaxPool2d(2, stride=1): two rolled maxes (qx then qy) -------------
    hm = jnp.maximum(a2, pltpu.roll(a2, R1 - 1, axis=0))
    pm_ref[...] = jnp.maximum(hm, pltpu.roll(hm, R1 - 5, axis=0))

    # ---- Flatten + linear1 + ReLU + linear2 (128-lane-padded tiles) --------
    # Pool2 output for (b, ry, rx) lives at scratch row b*25 + ry*5 + rx:
    # one strided read per (ry, rx) gives the whole-batch (B, 32) LHS.
    h = None
    for ry in range(2):
        for rx in range(2):
            lhs = pm_ref[pl.ds(ry * 5 + rx, B, stride=25), :]      # (B, 32)
            d = jnp.dot(lhs, w1s_ref[ry * 2 + rx],
                        preferred_element_type=jnp.float32)        # (B, 128)
            h = d if h is None else h + d
    h = jnp.maximum(h + b_ref[0:1, :], 0.0)                        # relu(linear1)
    out_ref[...] = (jnp.dot(h, w2p_ref[...], preferred_element_type=jnp.float32)
                    + b_ref[1:2, :])                               # padded logits


# ----------------------------------------------------------------------------
# Wrapper: input-side layout plumbing + single pallas_call
# ----------------------------------------------------------------------------
def cnn_critic2_forward(params, x):
    """x: NCHW float32 (B, 8, 22, 22) -> (B, action_space) logits."""
    B, C, Himg, Wimg = x.shape
    assert (C, Himg, Wimg) == (8, 22, 22), \
        "architecture fixes Flatten width to 128 => input must be (B, 8, 22, 22)"
    hid = params["lin1_w"].shape[0]
    act = params["lin2_w"].shape[0]
    assert hid <= 128 and act <= 128
    x = x.astype(jnp.float32)

    R1 = ((B * 25 + 7) // 8) * 8     # rows per maxpool tap block, sublane aligned

    # ---- conv1 im2col grouped by MaxPool2d(2) tap (layout plumbing only) ----
    # NHWC first so channels are already the last (lane) dim; feature order is
    # (c, ki, kj), matching conv1_w.reshape(32, 128).
    # TODO(synk): at tiny batch this wrapper-side repack still dominates
    # wall-clock; folding it into the pallas_call input DMA would remove it.
    xh = jnp.transpose(x, (0, 2, 3, 1))                            # (B, 22, 22, 8)
    cols = [xh[:, ki:ki + 19:2, kj:kj + 19:2, :]                   # (B, 10, 10, 8)
            for ki in range(4) for kj in range(4)]
    p = jnp.stack(cols, axis=-1).reshape(B, 10, 10, 128)           # feat = c*16+ki*4+kj
    # group rows by maxpool tap: tap (dy, dx) holds conv output (2*py+dy, 2*px+dx)
    p = p.reshape(B, 5, 2, 5, 2, 128).transpose(2, 4, 0, 1, 3, 5)  # (dy,dx,B,py,px,f)
    p = p.reshape(4, B * 25, 128)
    p = jnp.pad(p, ((0, 0), (0, R1 - B * 25), (0, 0)))             # zero pad rows
    patches = p.reshape(4 * R1, 128)

    # ---- weight repacking (layout only, no math) ----------------------------
    w1 = params["conv1_w"].reshape(32, 128).T.astype(jnp.float32)            # (128, 32)
    w2t = params["conv2_w"].transpose(2, 3, 1, 0).reshape(9, 32, 32).astype(jnp.float32)
    bn = jnp.stack([params["bn1_gamma"], params["bn1_beta"],
                    params["bn2_gamma"], params["bn2_beta"]], axis=0).astype(jnp.float32)
    w1s = params["lin1_w"].reshape(hid, 32, 2, 2).transpose(2, 3, 1, 0).reshape(4, 32, hid)
    w1s = jnp.pad(w1s, ((0, 0), (0, 0), (0, 128 - hid))).astype(jnp.float32)
    b1p = jnp.pad(params["lin1_b"], (0, 128 - hid))
    w2p = jnp.pad(params["lin2_w"].T, ((0, 128 - hid), (0, 128 - act))).astype(jnp.float32)
    b2p = jnp.pad(params["lin2_b"], (0, 128 - act))
    mlp_bias = jnp.stack([b1p, b2p], axis=0).astype(jnp.float32)             # (2, 128)

    # conv2 valid-row mask: rows b*25 + qy*5 + qx with qy, qx < 3 (built once,
    # host side, becomes a tiny constant).
    m2 = np.zeros((R1, 1), np.float32)
    for b in range(B):
        for qy in range(3):
            for qx in range(3):
                m2[b * 25 + qy * 5 + qx, 0] = 1.0
    mask2 = jnp.asarray(m2)

    # NOTE (v7x): a leading "parallel" batch grid axis would engage the second
    # TensorCore at large B, but needs cross-shard BN stat combining; at small
    # B the single-invocation design is strictly better.
    logits_padded = pl.pallas_call(
        cnn_critic2_kernel,
        out_shape=jax.ShapeDtypeStruct((B, 128), jnp.float32),
        grid=(1,),
        in_specs=[
            pl.BlockSpec((4 * R1, 128), lambda i: (0, 0)),
            pl.BlockSpec((128, 32), lambda i: (0, 0)),
            pl.BlockSpec((9, 32, 32), lambda i: (0, 0, 0)),
            pl.BlockSpec((4, 32), lambda i: (0, 0)),
            pl.BlockSpec((R1, 1), lambda i: (0, 0)),
            pl.BlockSpec((4, 32, 128), lambda i: (0, 0, 0)),
            pl.BlockSpec((128, 128), lambda i: (0, 0)),
            pl.BlockSpec((2, 128), lambda i: (0, 0)),
        ],
        out_specs=pl.BlockSpec((B, 128), lambda i: (0, 0)),
        scratch_shapes=[pltpu.VMEM((R1, 32), jnp.float32)],
        compiler_params=pltpu.CompilerParams(dimension_semantics=("arbitrary",)),
    )(patches, w1, w2t, bn, mask2, w1s, w2p, mlp_bias)

    return logits_padded[:, :act]


# ----------------------------------------------------------------------------
# Parameters
# ----------------------------------------------------------------------------
def init_params(key, hidden_size=64, action_space=4):
    ks = jax.random.split(key, 4)
    s = 0.1
    # NOTE: conv biases are intentionally omitted -- both convs feed
    # training-mode BatchNorm, whose mean subtraction cancels a per-channel
    # bias exactly, so the forward value is unchanged.
    return {
        "conv1_w": jax.random.normal(ks[0], (32, 8, 4, 4), jnp.float32) * s,
        "bn1_gamma": jnp.ones((32,), jnp.float32),
        "bn1_beta": jnp.zeros((32,), jnp.float32),
        "conv2_w": jax.random.normal(ks[1], (32, 32, 3, 3), jnp.float32) * s,
        "bn2_gamma": jnp.ones((32,), jnp.float32),
        "bn2_beta": jnp.zeros((32,), jnp.float32),
        "lin1_w": jax.random.normal(ks[2], (hidden_size, 128), jnp.float32) * s,
        "lin1_b": jnp.zeros((hidden_size,), jnp.float32),
        "lin2_w": jax.random.normal(ks[3], (action_space, hidden_size), jnp.float32) * s,
        "lin2_b": jnp.zeros((action_space,), jnp.float32),
    }


if __name__ == "__main__":
    key = jax.random.PRNGKey(0)
    pkey, xkey = jax.random.split(key)

    # Spatial size 22 is implied by the module: Flatten output must be 128
    # (32 channels * 2 * 2): 22 -conv4/2-> 10 -pool2-> 5 -conv3/1-> 3 -pool2/1-> 2.
    x = jax.random.normal(xkey, (2, 8, 22, 22), jnp.float32)
    params = init_params(pkey, hidden_size=64, action_space=4)

    out = jax.jit(cnn_critic2_forward)(params, x)
    out = jax.block_until_ready(out)

    assert out.shape == (2, 4)
    assert bool(jnp.all(jnp.isfinite(out)))
    print("KERNEL_OK")
</pallas_src>

<mosaic_0001>
module attributes {stable_mosaic.version = 11 : i64} {
  func.func @cnn_critic2_kernel(%arg0: i32, %arg1: memref<224x128xf32, #tpu.memory_space<vmem>>, %arg2: memref<128x32xf32, #tpu.memory_space<vmem>>, %arg3: memref<9x32x32xf32, #tpu.memory_space<vmem>>, %arg4: memref<4x32xf32, #tpu.memory_space<vmem>>, %arg5: memref<56x1xf32, #tpu.memory_space<vmem>>, %arg6: memref<4x32x128xf32, #tpu.memory_space<vmem>>, %arg7: memref<128x128xf32, #tpu.memory_space<vmem>>, %arg8: memref<2x128xf32, #tpu.memory_space<vmem>>, %arg9: memref<2x128xf32, #tpu.memory_space<vmem>>, %arg10: memref<56x32xf32, #tpu.memory_space<vmem>>) attributes {dimension_semantics = [#tpu.dimension_semantics<arbitrary>], iteration_bounds = array<i64: 1>, scalar_prefetch = 0 : i64, scratch_operands = 1 : i64, tpu.core_type = #tpu.core_type<tc>, window_params = [{pipeline_mode = #tpu.pipeline_mode<synchronous>, transform_indices = @transform_0, window_bounds = array<i64: 224, 128>}, {pipeline_mode = #tpu.pipeline_mode<synchronous>, transform_indices = @transform_1, window_bounds = array<i64: 128, 32>}, {pipeline_mode = #tpu.pipeline_mode<synchronous>, transform_indices = @transform_2, window_bounds = array<i64: 9, 32, 32>}, {pipeline_mode = #tpu.pipeline_mode<synchronous>, transform_indices = @transform_3, window_bounds = array<i64: 4, 32>}, {pipeline_mode = #tpu.pipeline_mode<synchronous>, transform_indices = @transform_4, window_bounds = array<i64: 56, 1>}, {pipeline_mode = #tpu.pipeline_mode<synchronous>, transform_indices = @transform_5, window_bounds = array<i64: 4, 32, 128>}, {pipeline_mode = #tpu.pipeline_mode<synchronous>, transform_indices = @transform_6, window_bounds = array<i64: 128, 128>}, {pipeline_mode = #tpu.pipeline_mode<synchronous>, transform_indices = @transform_7, window_bounds = array<i64: 2, 128>}, {pipeline_mode = #tpu.pipeline_mode<synchronous>, transform_indices = @transform_8, window_bounds = array<i64: 2, 128>}]} {
    %c0 = arith.constant 0 : index
    %c0_0 = arith.constant 0 : index
    %0 = vector.load %arg1[%c0, %c0_0] : memref<224x128xf32, #tpu.memory_space<vmem>>, vector<224x128xf32>
    %c0_1 = arith.constant 0 : index
    %c0_2 = arith.constant 0 : index
    %1 = vector.load %arg2[%c0_1, %c0_2] : memref<128x32xf32, #tpu.memory_space<vmem>>, vector<128x32xf32>
    %cst = arith.constant dense<0.000000e+00> : vector<224x32xf32>
    %2 = tpu.matmul %0, %1, %cst {dimension_numbers = #tpu.dot_dimension_numbers<[1], [0], [0], [1], [0, 0, 1, 1], [], []>} : vector<224x128xf32>, vector<128x32xf32>, vector<224x32xf32> -> vector<224x32xf32>
    %cst_3 = arith.constant dense<0.000000e+00> : vector<32xf32>
    %3 = vector.multi_reduction <add>, %2, %cst_3 [0] : vector<224x32xf32> to vector<32xf32>
    %4 = vector.shape_cast %3 : vector<32xf32> to vector<1x32xf32>
    %cst_4 = arith.constant 5.000000e-03 : f32
    %5 = vector.broadcast %cst_4 : f32 to vector<1x32xf32>
    %6 = arith.mulf %4, %5 : vector<1x32xf32>
    %7 = vector.broadcast %6 : vector<1x32xf32> to vector<224x32xf32>
    %8 = arith.subf %2, %7 : vector<224x32xf32>
    %9 = arith.mulf %8, %8 : vector<224x32xf32>
    %cst_5 = arith.constant dense<0.000000e+00> : vector<32xf32>
    %10 = vector.multi_reduction <add>, %9, %cst_5 [0] : vector<224x32xf32> to vector<32xf32>
    %11 = vector.shape_cast %10 : vector<32xf32> to vector<1x32xf32>
    %cst_6 = arith.constant 2.400000e+01 : f32
    %12 = vector.broadcast %cst_6 : f32 to vector<1x32xf32>
    %13 = arith.mulf %12, %6 : vector<1x32xf32>
    %14 = arith.mulf %13, %6 : vector<1x32xf32>
    %15 = arith.subf %11, %14 : vector<1x32xf32>
    %cst_7 = arith.constant 5.000000e-03 : f32
    %16 = vector.broadcast %cst_7 : f32 to vector<1x32xf32>
    %17 = arith.mulf %15, %16 : vector<1x32xf32>
    %c0_8 = arith.constant 0 : index
    %c0_9 = arith.constant 0 : index
    %18 = vector.load %arg4[%c0_8, %c0_9] : memref<4x32xf32, #tpu.memory_space<vmem>>, vector<1x32xf32>
    %cst_10 = arith.constant 0.000000e+00 : f32
    %19 = vector.broadcast %cst_10 : f32 to vector<1x32xf32>
    %20 = arith.maximumf %17, %19 : vector<1x32xf32>
    %cst_11 = arith.constant 9.99999974E-6 : f32
    %21 = vector.broadcast %cst_11 : f32 to vector<1x32xf32>
    %22 = arith.addf %20, %21 : vector<1x32xf32>
    %23 = math.rsqrt %22 : vector<1x32xf32>
    %24 = arith.mulf %18, %23 : vector<1x32xf32>
    %c1 = arith.constant 1 : index
    %c0_12 = arith.constant 0 : index
    %25 = vector.load %arg4[%c1, %c0_12] : memref<4x32xf32, #tpu.memory_space<vmem>>, vector<1x32xf32>
    %26 = arith.mulf %6, %24 : vector<1x32xf32>
    %27 = arith.subf %25, %26 : vector<1x32xf32>
    %28 = vector.broadcast %24 : vector<1x32xf32> to vector<224x32xf32>
    %29 = arith.mulf %2, %28 : vector<224x32xf32>
    %30 = vector.broadcast %27 : vector<1x32xf32> to vector<224x32xf32>
    %31 = arith.addf %29, %30 : vector<224x32xf32>
    %cst_13 = arith.constant 0.000000e+00 : f32
    %32 = vector.broadcast %cst_13 : f32 to vector<224x32xf32>
    %33 = arith.maximumf %31, %32 : vector<224x32xf32>
    %34 = vector.extract_strided_slice %33 {offsets = [0, 0], sizes = [56, 32], strides = [1, 1]} : vector<224x32xf32> to vector<56x32xf32>
    %35 = vector.extract_strided_slice %33 {offsets = [56, 0], sizes = [56, 32], strides = [1, 1]} : vector<224x32xf32> to vector<56x32xf32>
    %36 = arith.maximumf %34, %35 : vector<56x32xf32>
    %37 = vector.extract_strided_slice %33 {offsets = [112, 0], sizes = [56, 32], strides = [1, 1]} : vector<224x32xf32> to vector<56x32xf32>
    %38 = vector.extract_strided_slice %33 {offsets = [168, 0], sizes = [56, 32], strides = [1, 1]} : vector<224x32xf32> to vector<56x32xf32>
    %39 = arith.maximumf %37, %38 : vector<56x32xf32>
    %40 = arith.maximumf %36, %39 : vector<56x32xf32>
    %c0_14 = arith.constant 0 : index
    %c0_15 = arith.constant 0 : index
    %c0_16 = arith.constant 0 : index
    %41 = vector.load %arg3[%c0_14, %c0_15, %c0_16] : memref<9x32x32xf32, #tpu.memory_space<vmem>>, vector<1x32x32xf32>
    %42 = vector.shape_cast %41 : vector<1x32x32xf32> to vector<32x32xf32>
    %cst_17 = arith.constant dense<0.000000e+00> : vector<56x32xf32>
    %43 = tpu.matmul %40, %42, %cst_17 {dimension_numbers = #tpu.dot_dimension_numbers<[1], [0], [0], [1], [0, 0, 1, 1], [], []>} : vector<56x32xf32>, vector<32x32xf32>, vector<56x32xf32> -> vector<56x32xf32>
    %c55_i32 = arith.constant 55 : i32
    %44 = tpu.dynamic_rotate %40 by %c55_i32 dim 0 : vector<56x32xf32>, i32 -> vector<56x32xf32>
    %c1_18 = arith.constant 1 : index
    %c0_19 = arith.constant 0 : index
    %c0_20 = arith.constant 0 : index
    %45 = vector.load %arg3[%c1_18, %c0_19, %c0_20] : memref<9x32x32xf32, #tpu.memory_space<vmem>>, vector<1x32x32xf32>
    %46 = vector.shape_cast %45 : vector<1x32x32xf32> to vector<32x32xf32>
    %cst_21 = arith.constant dense<0.000000e+00> : vector<56x32xf32>
    %47 = tpu.matmul %44, %46, %cst_21 {dimension_numbers = #tpu.dot_dimension_numbers<[1], [0], [0], [1], [0, 0, 1, 1], [], []>} : vector<56x32xf32>, vector<32x32xf32>, vector<56x32xf32> -> vector<56x32xf32>
    %48 = arith.addf %43, %47 : vector<56x32xf32>
    %c54_i32 = arith.constant 54 : i32
    %49 = tpu.dynamic_rotate %40 by %c54_i32 dim 0 : vector<56x32xf32>, i32 -> vector<56x32xf32>
    %c2 = arith.constant 2 : index
    %c0_22 = arith.constant 0 : index
    %c0_23 = arith.constant 0 : index
    %50 = vector.load %arg3[%c2, %c0_22, %c0_23] : memref<9x32x32xf32, #tpu.memory_space<vmem>>, vector<1x32x32xf32>
    %51 = vector.shape_cast %50 : vector<1x32x32xf32> to vector<32x32xf32>
    %cst_24 = arith.constant dense<0.000000e+00> : vector<56x32xf32>
    %52 = tpu.matmul %49, %51, %cst_24 {dimension_numbers = #tpu.dot_dimension_numbers<[1], [0], [0], [1], [0, 0, 1, 1], [], []>} : vector<56x32xf32>, vector<32x32xf32>, vector<56x32xf32> -> vector<56x32xf32>
    %53 = arith.addf %48, %52 : vector<56x32xf32>
    %c51_i32 = arith.constant 51 : i32
    %54 = tpu.dynamic_rotate %40 by %c51_i32 dim 0 : vector<56x32xf32>, i32 -> vector<56x32xf32>
    %c3 = arith.constant 3 : index
    %c0_25 = arith.constant 0 : index
    %c0_26 = arith.constant 0 : index
    %55 = vector.load %arg3[%c3, %c0_25, %c0_26] : memref<9x32x32xf32, #tpu.memory_space<vmem>>, vector<1x32x32xf32>
    %56 = vector.shape_cast %55 : vector<1x32x32xf32> to vector<32x32xf32>
    %cst_27 = arith.constant dense<0.000000e+00> : vector<56x32xf32>
    %57 = tpu.matmul %54, %56, %cst_27 {dimension_numbers = #tpu.dot_dimension_numbers<[1], [0], [0], [1], [0, 0, 1, 1], [], []>} : vector<56x32xf32>, vector<32x32xf32>, vector<56x32xf32> -> vector<56x32xf32>
    %58 = arith.addf %53, %57 : vector<56x32xf32>
    %c50_i32 = arith.constant 50 : i32
    %59 = tpu.dynamic_rotate %40 by %c50_i32 dim 0 : vector<56x32xf32>, i32 -> vector<56x32xf32>
    %c4 = arith.constant 4 : index
    %c0_28 = arith.constant 0 : index
    %c0_29 = arith.constant 0 : index
    %60 = vector.load %arg3[%c4, %c0_28, %c0_29] : memref<9x32x32xf32, #tpu.memory_space<vmem>>, vector<1x32x32xf32>
    %61 = vector.shape_cast %60 : vector<1x32x32xf32> to vector<32x32xf32>
    %cst_30 = arith.constant dense<0.000000e+00> : vector<56x32xf32>
    %62 = tpu.matmul %59, %61, %cst_30 {dimension_numbers = #tpu.dot_dimension_numbers<[1], [0], [0], [1], [0, 0, 1, 1], [], []>} : vector<56x32xf32>, vector<32x32xf32>, vector<56x32xf32> -> vector<56x32xf32>
    %63 = arith.addf %58, %62 : vector<56x32xf32>
    %c49_i32 = arith.constant 49 : i32
    %64 = tpu.dynamic_rotate %40 by %c49_i32 dim 0 : vector<56x32xf32>, i32 -> vector<56x32xf32>
    %c5 = arith.constant 5 : index
    %c0_31 = arith.constant 0 : index
    %c0_32 = arith.constant 0 : index
    %65 = vector.load %arg3[%c5, %c0_31, %c0_32] : memref<9x32x32xf32, #tpu.memory_space<vmem>>, vector<1x32x32xf32>
    %66 = vector.shape_cast %65 : vector<1x32x32xf32> to vector<32x32xf32>
    %cst_33 = arith.constant dense<0.000000e+00> : vector<56x32xf32>
    %67 = tpu.matmul %64, %66, %cst_33 {dimension_numbers = #tpu.dot_dimension_numbers<[1], [0], [0], [1], [0, 0, 1, 1], [], []>} : vector<56x32xf32>, vector<32x32xf32>, vector<56x32xf32> -> vector<56x32xf32>
    %68 = arith.addf %63, %67 : vector<56x32xf32>
    %c46_i32 = arith.constant 46 : i32
    %69 = tpu.dynamic_rotate %40 by %c46_i32 dim 0 : vector<56x32xf32>, i32 -> vector<56x32xf32>
    %c6 = arith.constant 6 : index
    %c0_34 = arith.constant 0 : index
    %c0_35 = arith.constant 0 : index
    %70 = vector.load %arg3[%c6, %c0_34, %c0_35] : memref<9x32x32xf32, #tpu.memory_space<vmem>>, vector<1x32x32xf32>
    %71 = vector.shape_cast %70 : vector<1x32x32xf32> to vector<32x32xf32>
    %cst_36 = arith.constant dense<0.000000e+00> : vector<56x32xf32>
    %72 = tpu.matmul %69, %71, %cst_36 {dimension_numbers = #tpu.dot_dimension_numbers<[1], [0], [0], [1], [0, 0, 1, 1], [], []>} : vector<56x32xf32>, vector<32x32xf32>, vector<56x32xf32> -> vector<56x32xf32>
    %73 = arith.addf %68, %72 : vector<56x32xf32>
    %c45_i32 = arith.constant 45 : i32
    %74 = tpu.dynamic_rotate %40 by %c45_i32 dim 0 : vector<56x32xf32>, i32 -> vector<56x32xf32>
    %c7 = arith.constant 7 : index
    %c0_37 = arith.constant 0 : index
    %c0_38 = arith.constant 0 : index
    %75 = vector.load %arg3[%c7, %c0_37, %c0_38] : memref<9x32x32xf32, #tpu.memory_space<vmem>>, vector<1x32x32xf32>
    %76 = vector.shape_cast %75 : vector<1x32x32xf32> to vector<32x32xf32>
    %cst_39 = arith.constant dense<0.000000e+00> : vector<56x32xf32>
    %77 = tpu.matmul %74, %76, %cst_39 {dimension_numbers = #tpu.dot_dimension_numbers<[1], [0], [0], [1], [0, 0, 1, 1], [], []>} : vector<56x32xf32>, vector<32x32xf32>, vector<56x32xf32> -> vector<56x32xf32>
    %78 = arith.addf %73, %77 : vector<56x32xf32>
    %c44_i32 = arith.constant 44 : i32
    %79 = tpu.dynamic_rotate %40 by %c44_i32 dim 0 : vector<56x32xf32>, i32 -> vector<56x32xf32>
    %c8 = arith.constant 8 : index
    %c0_40 = arith.constant 0 : index
    %c0_41 = arith.constant 0 : index
    %80 = vector.load %arg3[%c8, %c0_40, %c0_41] : memref<9x32x32xf32, #tpu.memory_space<vmem>>, vector<1x32x32xf32>
    %81 = vector.shape_cast %80 : vector<1x32x32xf32> to vector<32x32xf32>
    %cst_42 = arith.constant dense<0.000000e+00> : vector<56x32xf32>
    %82 = tpu.matmul %79, %81, %cst_42 {dimension_numbers = #tpu.dot_dimension_numbers<[1], [0], [0], [1], [0, 0, 1, 1], [], []>} : vector<56x32xf32>, vector<32x32xf32>, vector<56x32xf32> -> vector<56x32xf32>
    %83 = arith.addf %78, %82 : vector<56x32xf32>
    %c0_43 = arith.constant 0 : index
    %c0_44 = arith.constant 0 : index
    %84 = vector.load %arg5[%c0_43, %c0_44] : memref<56x1xf32, #tpu.memory_space<vmem>>, vector<56x1xf32>
    %85 = vector.broadcast %84 : vector<56x1xf32> to vector<56x32xf32>
    %86 = arith.mulf %83, %85 : vector<56x32xf32>
    %cst_45 = arith.constant dense<0.000000e+00> : vector<32xf32>
    %87 = vector.multi_reduction <add>, %86, %cst_45 [0] : vector<56x32xf32> to vector<32xf32>
    %88 = vector.shape_cast %87 : vector<32xf32> to vector<1x32xf32>
    %cst_46 = arith.constant 0.055555556 : f32
    %89 = vector.broadcast %cst_46 : f32 to vector<1x32xf32>
    %90 = arith.mulf %88, %89 : vector<1x32xf32>
    %91 = vector.broadcast %90 : vector<1x32xf32> to vector<56x32xf32>
    %92 = arith.subf %83, %91 : vector<56x32xf32>
    %93 = vector.broadcast %84 : vector<56x1xf32> to vector<56x32xf32>
    %94 = arith.mulf %92, %93 : vector<56x32xf32>
    %95 = arith.mulf %94, %94 : vector<56x32xf32>
    %cst_47 = arith.constant dense<0.000000e+00> : vector<32xf32>
    %96 = vector.multi_reduction <add>, %95, %cst_47 [0] : vector<56x32xf32> to vector<32xf32>
    %97 = vector.shape_cast %96 : vector<32xf32> to vector<1x32xf32>
    %cst_48 = arith.constant 0.055555556 : f32
    %98 = vector.broadcast %cst_48 : f32 to vector<1x32xf32>
    %99 = arith.mulf %97, %98 : vector<1x32xf32>
    %c2_49 = arith.constant 2 : index
    %c0_50 = arith.constant 0 : index
    %100 = vector.load %arg4[%c2_49, %c0_50] : memref<4x32xf32, #tpu.memory_space<vmem>>, vector<1x32xf32>
    %cst_51 = arith.constant 0.000000e+00 : f32
    %101 = vector.broadcast %cst_51 : f32 to vector<1x32xf32>
    %102 = arith.maximumf %99, %101 : vector<1x32xf32>
    %cst_52 = arith.constant 9.99999974E-6 : f32
    %103 = vector.broadcast %cst_52 : f32 to vector<1x32xf32>
    %104 = arith.addf %102, %103 : vector<1x32xf32>
    %105 = math.rsqrt %104 : vector<1x32xf32>
    %106 = arith.mulf %100, %105 : vector<1x32xf32>
    %c3_53 = arith.constant 3 : index
    %c0_54 = arith.constant 0 : index
    %107 = vector.load %arg4[%c3_53, %c0_54] : memref<4x32xf32, #tpu.memory_space<vmem>>, vector<1x32xf32>
    %108 = arith.mulf %90, %106 : vector<1x32xf32>
    %109 = arith.subf %107, %108 : vector<1x32xf32>
    %110 = vector.broadcast %106 : vector<1x32xf32> to vector<56x32xf32>
    %111 = arith.mulf %83, %110 : vector<56x32xf32>
    %112 = vector.broadcast %109 : vector<1x32xf32> to vector<56x32xf32>
    %113 = arith.addf %111, %112 : vector<56x32xf32>
    %cst_55 = arith.constant 0.000000e+00 : f32
    %114 = vector.broadcast %cst_55 : f32 to vector<56x32xf32>
    %115 = arith.maximumf %113, %114 : vector<56x32xf32>
    %c55_i32_56 = arith.constant 55 : i32
    %116 = tpu.dynamic_rotate %115 by %c55_i32_56 dim 0 : vector<56x32xf32>, i32 -> vector<56x32xf32>
    %117 = arith.maximumf %115, %116 : vector<56x32xf32>
    %c51_i32_57 = arith.constant 51 : i32
    %118 = tpu.dynamic_rotate %117 by %c51_i32_57 dim 0 : vector<56x32xf32>, i32 -> vector<56x32xf32>
    %119 = arith.maximumf %117, %118 : vector<56x32xf32>
    %c0_58 = arith.constant 0 : index
    %c0_59 = arith.constant 0 : index
    %120 = vector.load %arg10[%c0_58, %c0_59] : memref<56x32xf32, #tpu.memory_space<vmem>>, vector<56x32xf32>
    tpu.vector_store %arg10[%c0_58, %c0_59], %119 {strides = array<i32>} : memref<56x32xf32, #tpu.memory_space<vmem>>, vector<56x32xf32>,
    %c0_60 = arith.constant 0 : index
    %c0_61 = arith.constant 0 : index
    %121 = tpu.strided_load %arg10[%c0_60, %c0_61] {strides = array<i32: 25, 1>} : memref<56x32xf32, #tpu.memory_space<vmem>>, vector<2x32xf32>
    %c0_62 = arith.constant 0 : index
    %c0_63 = arith.constant 0 : index
    %c0_64 = arith.constant 0 : index
    %122 = vector.load %arg6[%c0_62, %c0_63, %c0_64] : memref<4x32x128xf32, #tpu.memory_space<vmem>>, vector<1x32x128xf32>
    %123 = vector.shape_cast %122 : vector<1x32x128xf32> to vector<32x128xf32>
    %cst_65 = arith.constant dense<0.000000e+00> : vector<2x128xf32>
    %124 = tpu.matmul %121, %123, %cst_65 {dimension_numbers = #tpu.dot_dimension_numbers<[1], [0], [0], [1], [0, 0, 1, 1], [], []>} : vector<2x32xf32>, vector<32x128xf32>, vector<2x128xf32> -> vector<2x128xf32>
    %c1_66 = arith.constant 1 : index
    %c0_67 = arith.constant 0 : index
    %125 = tpu.strided_load %arg10[%c1_66, %c0_67] {strides = array<i32: 25, 1>} : memref<56x32xf32, #tpu.memory_space<vmem>>, vector<2x32xf32>
    %c1_68 = arith.constant 1 : index
    %c0_69 = arith.constant 0 : index
    %c0_70 = arith.constant 0 : index
    %126 = vector.load %arg6[%c1_68, %c0_69, %c0_70] : memref<4x32x128xf32, #tpu.memory_space<vmem>>, vector<1x32x128xf32>
    %127 = vector.shape_cast %126 : vector<1x32x128xf32> to vector<32x128xf32>
    %cst_71 = arith.constant dense<0.000000e+00> : vector<2x128xf32>
    %128 = tpu.matmul %125, %127, %cst_71 {dimension_numbers = #tpu.dot_dimension_numbers<[1], [0], [0], [1], [0, 0, 1, 1], [], []>} : vector<2x32xf32>, vector<32x128xf32>, vector<2x128xf32> -> vector<2x128xf32>
    %129 = arith.addf %124, %128 : vector<2x128xf32>
    %c5_72 = arith.constant 5 : index
    %c0_73 = arith.constant 0 : index
    %130 = tpu.strided_load %arg10[%c5_72, %c0_73] {strides = array<i32: 25, 1>} : memref<56x32xf32, #tpu.memory_space<vmem>>, vector<2x32xf32>
    %c2_74 = arith.constant 2 : index
    %c0_75 = arith.constant 0 : index
    %c0_76 = arith.constant 0 : index
    %131 = vector.load %arg6[%c2_74, %c0_75, %c0_76] : memref<4x32x128xf32, #tpu.memory_space<vmem>>, vector<1x32x128xf32>
    %132 = vector.shape_cast %131 : vector<1x32x128xf32> to vector<32x128xf32>
    %cst_77 = arith.constant dense<0.000000e+00> : vector<2x128xf32>
    %133 = tpu.matmul %130, %132, %cst_77 {dimension_numbers = #tpu.dot_dimension_numbers<[1], [0], [0], [1], [0, 0, 1, 1], [], []>} : vector<2x32xf32>, vector<32x128xf32>, vector<2x128xf32> -> vector<2x128xf32>
    %134 = arith.addf %129, %133 : vector<2x128xf32>
    %c6_78 = arith.constant 6 : index
    %c0_79 = arith.constant 0 : index
    %135 = tpu.strided_load %arg10[%c6_78, %c0_79] {strides = array<i32: 25, 1>} : memref<56x32xf32, #tpu.memory_space<vmem>>, vector<2x32xf32>
    %c3_80 = arith.constant 3 : index
    %c0_81 = arith.constant 0 : index
    %c0_82 = arith.constant 0 : index
    %136 = vector.load %arg6[%c3_80, %c0_81, %c0_82] : memref<4x32x128xf32, #tpu.memory_space<vmem>>, vector<1x32x128xf32>
    %137 = vector.shape_cast %136 : vector<1x32x128xf32> to vector<32x128xf32>
    %cst_83 = arith.constant dense<0.000000e+00> : vector<2x128xf32>
    %138 = tpu.matmul %135, %137, %cst_83 {dimension_numbers = #tpu.dot_dimension_numbers<[1], [0], [0], [1], [0, 0, 1, 1], [], []>} : vector<2x32xf32>, vector<32x128xf32>, vector<2x128xf32> -> vector<2x128xf32>
    %139 = arith.addf %134, %138 : vector<2x128xf32>
    %c0_84 = arith.constant 0 : index
    %c0_85 = arith.constant 0 : index
    %140 = vector.load %arg8[%c0_84, %c0_85] : memref<2x128xf32, #tpu.memory_space<vmem>>, vector<1x128xf32>
    %141 = vector.broadcast %140 : vector<1x128xf32> to vector<2x128xf32>
    %142 = arith.addf %139, %141 : vector<2x128xf32>
    %cst_86 = arith.constant 0.000000e+00 : f32
    %143 = vector.broadcast %cst_86 : f32 to vector<2x128xf32>
    %144 = arith.maximumf %142, %143 : vector<2x128xf32>
    %c0_87 = arith.constant 0 : index
    %c0_88 = arith.constant 0 : index
    %145 = vector.load %arg7[%c0_87, %c0_88] : memref<128x128xf32, #tpu.memory_space<vmem>>, vector<128x128xf32>
    %cst_89 = arith.constant dense<0.000000e+00> : vector<2x128xf32>
    %146 = tpu.matmul %144, %145, %cst_89 {dimension_numbers = #tpu.dot_dimension_numbers<[1], [0], [0], [1], [0, 0, 1, 1], [], []>} : vector<2x128xf32>, vector<128x128xf32>, vector<2x128xf32> -> vector<2x128xf32>
    %c1_90 = arith.constant 1 : index
    %c0_91 = arith.constant 0 : index
    %147 = vector.load %arg8[%c1_90, %c0_91] : memref<2x128xf32, #tpu.memory_space<vmem>>, vector<1x128xf32>
    %148 = vector.broadcast %147 : vector<1x128xf32> to vector<2x128xf32>
    %149 = arith.addf %146, %148 : vector<2x128xf32>
    %c0_92 = arith.constant 0 : index
    %c0_93 = arith.constant 0 : index
    %150 = vector.load %arg9[%c0_92, %c0_93] : memref<2x128xf32, #tpu.memory_space<vmem>>, vector<2x128xf32>
    tpu.vector_store %arg9[%c0_92, %c0_93], %149 {strides = array<i32>} : memref<2x128xf32, #tpu.memory_space<vmem>>, vector<2x128xf32>,
    return
  }
  func.func @transform_0(%arg0: i32) -> (i32, i32) {
    %c0_i32 = arith.constant 0 : i32
    %c0_i32_0 = arith.constant 0 : i32
    %c0_i32_1 = arith.constant 0 : i32
    return %c0_i32, %c0_i32_0 : i32, i32
  }
  func.func @transform_1(%arg0: i32) -> (i32, i32) {
    %c0_i32 = arith.constant 0 : i32
    %c0_i32_0 = arith.constant 0 : i32
    %c0_i32_1 = arith.constant 0 : i32
    return %c0_i32, %c0_i32_0 : i32, i32
  }
  func.func @transform_2(%arg0: i32) -> (i32, i32, i32) {
    %c0_i32 = arith.constant 0 : i32
    %c0_i32_0 = arith.constant 0 : i32
    %c0_i32_1 = arith.constant 0 : i32
    %c0_i32_2 = arith.constant 0 : i32
    return %c0_i32, %c0_i32_0, %c0_i32_1 : i32, i32, i32
  }
  func.func @transform_3(%arg0: i32) -> (i32, i32) {
    %c0_i32 = arith.constant 0 : i32
    %c0_i32_0 = arith.constant 0 : i32
    %c0_i32_1 = arith.constant 0 : i32
    return %c0_i32, %c0_i32_0 : i32, i32
  }
  func.func @transform_4(%arg0: i32) -> (i32, i32) {
    %c0_i32 = arith.constant 0 : i32
    %c0_i32_0 = arith.constant 0 : i32
    %c0_i32_1 = arith.constant 0 : i32
    return %c0_i32, %c0_i32_0 : i32, i32
  }
  func.func @transform_5(%arg0: i32) -> (i32, i32, i32) {
    %c0_i32 = arith.constant 0 : i32
    %c0_i32_0 = arith.constant 0 : i32
    %c0_i32_1 = arith.constant 0 : i32
    %c0_i32_2 = arith.constant 0 : i32
    return %c0_i32, %c0_i32_0, %c0_i32_1 : i32, i32, i32
  }
  func.func @transform_6(%arg0: i32) -> (i32, i32) {
    %c0_i32 = arith.constant 0 : i32
    %c0_i32_0 = arith.constant 0 : i32
    %c0_i32_1 = arith.constant 0 : i32
    return %c0_i32, %c0_i32_0 : i32, i32
  }
  func.func @transform_7(%arg0: i32) -> (i32, i32) {
    %c0_i32 = arith.constant 0 : i32
    %c0_i32_0 = arith.constant 0 : i32
    %c0_i32_1 = arith.constant 0 : i32
    return %c0_i32, %c0_i32_0 : i32, i32
  }
  func.func @transform_8(%arg0: i32) -> (i32, i32) {
    %c0_i32 = arith.constant 0 : i32
    %c0_i32_0 = arith.constant 0 : i32
    %c0_i32_1 = arith.constant 0 : i32
    return %c0_i32, %c0_i32_0 : i32, i32
  }
}

</mosaic_0001>

<bundles_post_ra>
// kernel: cnn_critic2_forward.1
= control target key start
LH: loop header
LB: loop body
LE: loop exit
PB: predicated region body
PF: predicated region fallthrough
CT: control target
= control target key end

     0   :  { %s4671_s0 = inlined_call_operand.vmem [shape: f32[224,128], index: 0, kind: input, shape index: {}]   ;;  %s4672_s1 = inlined_call_operand.vmem [shape: f32[128,32], index: 1, kind: input, shape index: {}]   ;;  %s4673_s2 = inlined_call_operand.vmem [shape: f32[9,32,32], index: 2, kind: input, shape index: {}]   ;;  %s4674_s3 = inlined_call_operand.vmem [shape: f32[4,32], index: 3, kind: input, shape index: {}]   ;;  %s4675_s4 = inlined_call_operand.vmem [shape: f32[56,1], index: 4, kind: input, shape index: {}]   ;;  %s4676_s5 = inlined_call_operand.vmem [shape: f32[4,32,128], index: 5, kind: input, shape index: {}]   ;;  %s4677_s6 = inlined_call_operand.vmem [shape: f32[128,128], index: 6, kind: input, shape index: {}]   ;;  %s4678_s7 = inlined_call_operand.vmem [shape: f32[2,128], index: 7, kind: input, shape index: {}]   ;;  %s4679_s8 = inlined_call_operand.hbm [shape: f32[2,128], index: 8, kind: output, shape index: {}]  }
   0x1   :  { %v73_v0 = vld [vmem:[%s4672_s1 + $0x78] sm:$0xff]  ;;  %v72_v1 = vld [vmem:[%s4672_s1 + $0x70] sm:$0xff]  ;;  %v71_v2 = vld [vmem:[%s4672_s1 + $0x68] sm:$0xff] }
   0x2   :  { %2774 = vmatprep.subr.mxu0 %v73_v0  ;;  %v70_v3 = vld [vmem:[%s4672_s1 + $0x60] sm:$0xff]  ;;  %v69_v5 = vld [vmem:[%s4672_s1 + $0x58] sm:$0xff]  ;;  %v68_v6 = vld [vmem:[%s4672_s1 + $0x50] sm:$0xff] }
   0x3   :  { %2775 = vmatpush3.msra.mxu0 %v73_v0  ;;  %v30_v4 = vld [vmem:[%s4671_s0] sm:$0xff]  ;;  %v67_v7 = vld [vmem:[%s4672_s1 + $0x48] sm:$0xff]  ;;  %v65_v9 = vld [vmem:[%s4672_s1 + $0x38] sm:$0xff] }
   0x4   :  { %2776 = vmatprep.subr.mxu0 %v72_v1  ;;  %2806 = vmatprep.mubr.f32.mxu0 %v30_v4  ;;  %v66_v8 = vld [vmem:[%s4672_s1 + $0x40] sm:$0xff] }
   0x5   :  { %2777 = vmatpush3.msra.mxu0 %v72_v1 }
   0x6   :  { %2778 = vmatprep.subr.mxu0 %v71_v2 }
   0x7   :  { %2779 = vmatpush3.msra.mxu0 %v71_v2 }
   0x8   :  { %2780 = vmatprep.subr.mxu0 %v70_v3 }
   0x9   :  { %2781 = vmatpush3.msra.mxu0 %v70_v3 }
   0xa   :  { %2782 = vmatprep.subr.mxu0 %v69_v5 }
   0xb   :  { %2783 = vmatpush3.msra.mxu0 %v69_v5 }
   0xc   :  { %2784 = vmatprep.subr.mxu0 %v68_v6 }
   0xd   :  { %2785 = vmatpush3.msra.mxu0 %v68_v6 }
   0xe   :  { %2786 = vmatprep.subr.mxu0 %v67_v7 }
   0xf   :  { %2787 = vmatpush3.msra.mxu0 %v67_v7 }
  0x10   :  { %13 = vsyncpa [#allocation4], 0  ;;  %2788 = vmatprep.subr.mxu0 %v66_v8  ;;  %v64_v10 = vld [vmem:[%s4672_s1 + $0x30] sm:$0xff]  ;;  %v63_v11 = vld [vmem:[%s4672_s1 + $0x28] sm:$0xff]  ;;  %vm279_vm0 = vcmask 261120   ;;  %vm3229_vm1 = vmmov 0  }
  0x11   :  { %2789 = vmatpush3.msra.mxu0 %v66_v8  ;;  %v62_v12 = vld [vmem:[%s4672_s1 + $0x20] sm:$0xff]  ;;  %v61_v13 = vld [vmem:[%s4672_s1 + $0x18] sm:$0xff]  ;;  %v60_v14 = vld [vmem:[%s4672_s1 + $0x10] sm:$0xff]  ;;  %s3231_s30 = smov [#allocation3]  }
  0x12   :  { %2790 = vmatprep.subr.mxu0 %v65_v9  ;;  %v59_v15 = vld [vmem:[%s4672_s1 + $0x8] sm:$0xff]  ;;  %v58_v16 = vld [vmem:[%s4672_s1] sm:$0xff]  ;;  %v32_v18 = vld [vmem:[%s4671_s0 + $0x10] sm:$0xff]  ;;  %s2473_s9 = sshll.u32 %s3231_s30, 4  ;;  %s2474_s9 = int_to_ptr.vmem [resolvable:$true] %s2473_s9 }
  0x13   :  { %2791 = vmatpush3.msra.mxu0 %v65_v9  ;;  %v31_v17 = vld [vmem:[%s4671_s0 + $0x8] sm:$0xff]  ;;  %v33_v19 = vld [vmem:[%s4671_s0 + $0x18] sm:$0xff]  ;;  %v34_v20 = vld [vmem:[%s4671_s0 + $0x20] sm:$0xff]  ;;  %s3206_s10 = scalar_lea.vmem %s2474_s9, 32  ;;  %p3211_p1 = scmp.lt.s32.totalorder %s2474_s9, %s2474_s9 }
  0x14   :  { %2792 = vmatprep.subr.mxu0 %v64_v10  ;;  %v35_v21 = vld [vmem:[%s4671_s0 + $0x28] sm:$0xff]  ;;  %v36_v22 = vld [vmem:[%s4671_s0 + $0x30] sm:$0xff]  ;;  %v37_v23 = vld [vmem:[%s4671_s0 + $0x38] sm:$0xff]  ;;  %p3207_p0 = scmp.ne.s32.totalorder %s2474_s9, %s3206_s10  ;;  %p3212_p2 = scmp.lt.s32.totalorder %s3206_s10, %s3206_s10 }
  0x15   :  { %2793 = vmatpush3.msra.mxu0 %v64_v10  ;;  %v38_v24 = vld [vmem:[%s4671_s0 + $0x40] sm:$0xff]  ;;  %v39_v25 = vld [vmem:[%s4671_s0 + $0x48] sm:$0xff]  ;;  %v40_v26 = vld [vmem:[%s4671_s0 + $0x50] sm:$0xff] }
  0x16   :  { %2794 = vmatprep.subr.mxu0 %v63_v11  ;;  %v41_v27 = vld [vmem:[%s4671_s0 + $0x58] sm:$0xff]  ;;  %v42_v28 = vld [vmem:[%s4671_s0 + $0x60] sm:$0xff]  ;;  %v43_v29 = vld [vmem:[%s4671_s0 + $0x68] sm:$0xff]  ;;  %p3213_p3 = por %p3212_p2, %p3211_p1 }
  0x17   :  { %2795 = vmatpush3.msra.mxu0 %v63_v11  ;;  %v44_v30 = vld [vmem:[%s4671_s0 + $0x70] sm:$0xff]  ;;  %v45_v31 = vld [vmem:[%s4671_s0 + $0x78] sm:$0xff]  ;;  %v46_v32 = vld [vmem:[%s4671_s0 + $0x80] sm:$0xff] }
  0x18   :  { %2796 = vmatprep.subr.mxu0 %v62_v12  ;;  %v47_v33 = vld [vmem:[%s4671_s0 + $0x88] sm:$0xff]  ;;  %v48_v34 = vld [vmem:[%s4671_s0 + $0x90] sm:$0xff]  ;;  %v49_v35 = vld [vmem:[%s4671_s0 + $0x98] sm:$0xff]  ;;  %p3214_p4 = pnand %p3213_p3, %p3207_p0 }
  0x19   :  { %2797 = vmatpush3.msra.mxu0 %v62_v12  ;;  %v50_v36 = vld [vmem:[%s4671_s0 + $0xa0] sm:$0xff]  ;;  %v51_v37 = vld [vmem:[%s4671_s0 + $0xa8] sm:$0xff]  ;;  %v52_v38 = vld [vmem:[%s4671_s0 + $0xb0] sm:$0xff] }
  0x1a   :  { %2798 = vmatprep.subr.mxu0 %v61_v13  ;;  %v53_v39 = vld [vmem:[%s4671_s0 + $0xb8] sm:$0xff]  ;;  %v54_v40 = vld [vmem:[%s4671_s0 + $0xc0] sm:$0xff]  ;;  %v55_v41 = vld [vmem:[%s4671_s0 + $0xc8] sm:$0xff] }
  0x1b   :  { %2799 = vmatpush3.msra.mxu0 %v61_v13  ;;  %v56_v42 = vld [vmem:[%s4671_s0 + $0xd0] sm:$0xff]  ;;  %v57_v43 = vld [vmem:[%s4671_s0 + $0xd8] sm:$0xff] }
  0x1c   :  { %2800 = vmatprep.subr.mxu0 %v60_v14 }
  0x1d   :  { %2801 = vmatpush3.msra.mxu0 %v60_v14 }
  0x1e   :  { %2802 = vmatprep.subr.mxu0 %v59_v15 }
  0x1f   :  { %2803 = vmatpush3.msra.mxu0 %v59_v15 }
  0x20   :  { %2804 = vmatprep.subr.mxu0 %v58_v16 }
  0x21   :  { %2805 = vmatpush3.msra.mxu0 %v58_v16 }
  0x22   :  { %2807 = vmatmul.mubr.f32.vlgmr.msra.gmra.mxu0 %v31_v17 }
  0x23   :  { %2809 = vmatprep.mubr.f32.mxu0 %v32_v18 }
  0x26   :  { %2810 = vmatmul.mubr.f32.gmra.mxu0 %v33_v19 }
  0x27   :  { %2812 = vmatprep.mubr.f32.mxu0 %v34_v20 }
  0x2a   :  { %2813 = vmatmul.mubr.f32.gmra.mxu0 %v35_v21 }
  0x2b   :  { %2815 = vmatprep.mubr.f32.mxu0 %v36_v22 }
  0x2e   :  { %2816 = vmatmul.mubr.f32.gmra.mxu0 %v37_v23 }
  0x2f   :  { %2818 = vmatprep.mubr.f32.mxu0 %v38_v24 }
  0x32   :  { %2819 = vmatmul.mubr.f32.gmra.mxu0 %v39_v25 }
  0x33   :  { %2821 = vmatprep.mubr.f32.mxu0 %v40_v26 }
  0x36   :  { %2822 = vmatmul.mubr.f32.gmra.mxu0 %v41_v27 }
  0x37   :  { %2824 = vmatprep.mubr.f32.mxu0 %v42_v28 }
  0x3a   :  { %2825 = vmatmul.mubr.f32.gmra.mxu0 %v43_v29 }
  0x3b   :  { %2827 = vmatprep.mubr.f32.mxu0 %v44_v30 }
  0x3e   :  { %2828 = vmatmul.mubr.f32.gmra.mxu0 %v45_v31 }
  0x3f   :  { %2830 = vmatprep.mubr.f32.mxu0 %v46_v32 }
  0x42   :  { %2831 = vmatmul.mubr.f32.gmra.mxu0 %v47_v33 }
  0x43   :  { %2833 = vmatprep.mubr.f32.mxu0 %v48_v34 }
  0x46   :  { %2834 = vmatmul.mubr.f32.gmra.mxu0 %v49_v35 }
  0x47   :  { %2836 = vmatprep.mubr.f32.mxu0 %v50_v36 }
  0x4a   :  { %2837 = vmatmul.mubr.f32.gmra.mxu0 %v51_v37 }
  0x4b   :  { %2839 = vmatprep.mubr.f32.mxu0 %v52_v38 }
  0x4e   :  { %2840 = vmatmul.mubr.f32.gmra.mxu0 %v53_v39 }
  0x4f   :  { %2842 = vmatprep.mubr.f32.mxu0 %v54_v40 }
  0x52   :  { %2843 = vmatmul.mubr.f32.gmra.mxu0 %v55_v41 }
  0x53   :  { %2845 = vmatprep.mubr.f32.mxu0 %v56_v42 }
  0x56   :  { %2846 = vmatmul.mubr.f32.gmra.mxu0 %v57_v43 }
  0xe2   :  { %v3409_v44 = vpop.f32.mrf.mxu0 }
  0xe3   :  { %v281_v48 = vsel %vm279_vm0, %v3409_v44, 0.0 }
  0xe4   :  { %v3411_v45 = vpop.f32.mrf.mxu0 }
  0xe5   :  { %v280_v46 = vsel %vm279_vm0, %v3411_v45, 0.0 }
  0xe6   :  { %v3415_v47 = vpop.f32.mrf.mxu0  ;;  %v282_v49 = vadd.f32 %v281_v48, %v280_v46 }
  0xe7   :  { %v285_v54 = vsel %vm279_vm0, %v3415_v47, 0.0 }
  0xe8   :  { %v3419_v50 = vpop.f32.mrf.mxu0 }
  0xe9   :  { %v283_v51 = vsel %vm279_vm0, %v3419_v50, 0.0 }
  0xea   :  { %v284_v52 = vadd.f32 %v283_v51, %v282_v49  ;;  %v3423_v53 = vpop.f32.mrf.mxu0 }
  0xeb   :  { %v289_v60 = vsel %vm279_vm0, %v3423_v53, 0.0 }
  0xec   :  { %v3427_v55 = vpop.f32.mrf.mxu0  ;;  %v286_v56 = vadd.f32 %v285_v54, %v284_v52 }
  0xed   :  { %v287_v57 = vsel %vm279_vm0, %v3427_v55, 0.0 }
  0xee   :  { %v288_v58 = vadd.f32 %v287_v57, %v286_v56  ;;  %v3431_v59 = vpop.f32.mrf.mxu0 }
  0xef   :  { %v293_v2 = vsel %vm279_vm0, %v3431_v59, 0.0 }
  0xf0   :  { %v3435_v61 = vpop.f32.mrf.mxu0  ;;  %v290_v62 = vadd.f32 %v289_v60, %v288_v58 }
  0xf1   :  { %v291_v63 = vsel %vm279_vm0, %v3435_v61, 0.0 }
  0xf2   :  { %v292_v0 = vadd.f32 %v291_v63, %v290_v62  ;;  %v3439_v1 = vpop.f32.mrf.mxu0 }
  0xf3   :  { %v297_v8 = vsel %vm279_vm0, %v3439_v1, 0.0 }
  0xf4   :  { %v3443_v3 = vpop.f32.mrf.mxu0  ;;  %v294_v4 = vadd.f32 %v293_v2, %v292_v0 }
  0xf5   :  { %v295_v5 = vsel %vm279_vm0, %v3443_v3, 0.0 }
  0xf6   :  { %v296_v6 = vadd.f32 %v295_v5, %v294_v4  ;;  %v3447_v7 = vpop.f32.mrf.mxu0 }
  0xf7   :  { %v301_v14 = vsel %vm279_vm0, %v3447_v7, 0.0 }
  0xf8   :  { %v3451_v9 = vpop.f32.mrf.mxu0  ;;  %v298_v10 = vadd.f32 %v297_v8, %v296_v6 }
  0xf9   :  { %v299_v11 = vsel %vm279_vm0, %v3451_v9, 0.0 }
  0xfa   :  { %v300_v12 = vadd.f32 %v299_v11, %v298_v10  ;;  %v3455_v13 = vpop.f32.mrf.mxu0 }
  0xfb   :  { %v305_v20 = vsel %vm279_vm0, %v3455_v13, 0.0 }
  0xfc   :  { %v3459_v15 = vpop.f32.mrf.mxu0  ;;  %v302_v16 = vadd.f32 %v301_v14, %v300_v12  ;;  %v2484_v14 = vld [vmem:[%s4673_s2 + $0x38] sm:$0xff] }
  0xfd   :  { %v303_v17 = vsel %vm279_vm0, %v3459_v15, 0.0 }
  0xfe   :  { %v304_v18 = vadd.f32 %v303_v17, %v302_v16  ;;  %v3463_v19 = vpop.f32.mrf.mxu0  ;;  %v3527_v16 = vld [vmem:[%s4673_s2 + $0x78] sm:$0xff] }
  0xff   :  { %v309_v26 = vsel %vm279_vm0, %v3463_v19, 0.0 }
 0x100   :  { %v3467_v21 = vpop.f32.mrf.mxu0  ;;  %v306_v22 = vadd.f32 %v305_v20, %v304_v18  ;;  %v3228_v18 = vmov 0.0   ;;  %v2483_v20 = vld [vmem:[%s4673_s2 + $0x30] sm:$0xff] }
 0x101   :  { %v307_v23 = vsel %vm279_vm0, %v3467_v21, 0.0  ;;  %2848 = vmatprep.subr.mxu1 %v3228_v18  ;;  %2935 = vmatprep.subr.mxu0 %v3228_v18 }
 0x102   :  { %v308_v24 = vadd.f32 %v307_v23, %v306_v22  ;;  %v3471_v25 = vpop.f32.mrf.mxu0  ;;  %v3537_v22 = vld [vmem:[%s4673_s2 + $0x70] sm:$0xff]  ;;  %2849 = vmatpush3.msra.mxu1 %v2484_v14  ;;  %2936 = vmatpush3.msra.mxu0 %v3527_v16 }
 0x103   :  { %v313_v32 = vsel %vm279_vm0, %v3471_v25, 0.0  ;;  %2850 = vmatprep.subr.mxu1 %v3228_v18  ;;  %2937 = vmatprep.subr.mxu0 %v3228_v18 }
 0x104   :  { %v3475_v27 = vpop.f32.mrf.mxu0  ;;  %v310_v28 = vadd.f32 %v309_v26, %v308_v24  ;;  %v2482_v24 = vld [vmem:[%s4673_s2 + $0x28] sm:$0xff]  ;;  %2851 = vmatpush3.msra.mxu1 %v2483_v20  ;;  %2938 = vmatpush3.msra.mxu0 %v3537_v22 }
 0x105   :  { %v311_v29 = vsel %vm279_vm0, %v3475_v27, 0.0  ;;  %v3548_v26 = vld [vmem:[%s4673_s2 + $0x68] sm:$0xff]  ;;  %2852 = vmatprep.subr.mxu1 %v3228_v18  ;;  %2939 = vmatprep.subr.mxu0 %v3228_v18 }
 0x106   :  { %v312_v30 = vadd.f32 %v311_v29, %v310_v28  ;;  %v3479_v31 = vpop.f32.mrf.mxu0  ;;  %v2481_v29 = vld [vmem:[%s4673_s2 + $0x20] sm:$0xff]  ;;  %2853 = vmatpush3.msra.mxu1 %v2482_v24  ;;  %2940 = vmatpush3.msra.mxu0 %v3548_v26 }
 0x107   :  { %v317_v38 = vsel %vm279_vm0, %v3479_v31, 0.0  ;;  %2854 = vmatprep.subr.mxu1 %v3228_v18  ;;  %2941 = vmatprep.subr.mxu0 %v3228_v18 }
 0x108   :  { %v3483_v33 = vpop.f32.mrf.mxu0  ;;  %v314_v34 = vadd.f32 %v313_v32, %v312_v30  ;;  %v3560_v30 = vld [vmem:[%s4673_s2 + $0x60] sm:$0xff]  ;;  %2855 = vmatpush3.msra.mxu1 %v2481_v29  ;;  %2856 = vmatprep.mubr.msk.f32.mxu1 %vm3229_vm1, %v3228_v18 }
 0x109   :  { %v315_v35 = vsel %vm279_vm0, %v3483_v33, 0.0  ;;  %2877 = vmatprep.subr.mxu1 %v3228_v18  ;;  %2942 = vmatpush3.msra.mxu0 %v3560_v30 }
 0x10a   :  { %v316_v36 = vadd.f32 %v315_v35, %v314_v34  ;;  %v3487_v37 = vpop.f32.mrf.mxu0  ;;  %2943 = vmatprep.mubr.msk.f32.mxu0 %vm3229_vm1, %v3228_v18  ;;  %2993 = vmatprep.subr.mxu0 %v3228_v18 }
 0x10b   :  { %v321_v46 = vsel %vm279_vm0, %v3487_v37, 0.0 }
 0x10c   :  { %v3491_v39 = vpop.f32.mrf.mxu0  ;;  %v318_v40 = vadd.f32 %v317_v38, %v316_v36 }
 0x10d   :  { %v319_v41 = vsel %vm279_vm0, %v3491_v39, 0.0 }
 0x10e   :  { %v320_v42 = vadd.f32 %v319_v41, %v318_v40  ;;  %v3495_v43 = vpop.f32.mrf.mxu0 }
 0x10f   :  { %v325_v56 = vsel %vm279_vm0, %v3495_v43, 0.0 }
 0x110   :  { %v3499_v48 = vpop.f32.mrf.mxu0  ;;  %v322_v49 = vadd.f32 %v321_v46, %v320_v42 }
 0x111   :  { %v323_v51 = vsel %vm279_vm0, %v3499_v48, 0.0 }
 0x112   :  { %v324_v52 = vadd.f32 %v323_v51, %v322_v49  ;;  %v3503_v54 = vpop.f32.mrf.mxu0 }
 0x113   :  { %v329_v0 = vsel %vm279_vm0, %v3503_v54, 0.0 }
 0x114   :  { %v3507_v57 = vpop.f32.mrf.mxu0  ;;  %v326_v58 = vadd.f32 %v325_v56, %v324_v52 }
 0x115   :  { %v327_v60 = vsel %vm279_vm0, %v3507_v57, 0.0 }
 0x116   :  { %v328_v62 = vadd.f32 %v327_v60, %v326_v58  ;;  %v3511_v63 = vpop.f32.mrf.mxu0 }
 0x117   :  { %v333_v8 = vsel %vm279_vm0, %v3511_v63, 0.0 }
 0x118   :  { %v3515_v2 = vpop.f32.mrf.mxu0  ;;  %v330_v4 = vadd.f32 %v329_v0, %v328_v62 }
 0x119   :  { %v331_v5 = vsel %vm279_vm0, %v3515_v2, 0.0 }
 0x11a   :  { %v332_v6 = vadd.f32 %v331_v5, %v330_v4 }
 0x11c   :  { %v334_v10 = vadd.f32 %v333_v8, %v332_v6 }
 0x11e   :  { %v335_v11 = vrot.slane %v334_v10, 4 }
 0x120   :  { %v336_v12 = vadd.f32 %v335_v11, %v334_v10 }
 0x122   :  { %v337_v17 = vrot.slane %v336_v12, 2 }
 0x124   :  { %v338_v23 = vadd.f32 %v337_v17, %v336_v12 }
 0x126   :  { %v339_v28 = vrot.slane %v338_v23, 1 }
 0x128   :  { %v340_v32 = vadd.f32 %v339_v28, %v338_v23 }
 0x12a   :  { %v3571_v34 = vmul.f32 0.005, %v340_v32 }
 0x12c   :  { %v342_v35 = vsub.f32 %v3411_v45, %v3571_v34  ;;  %v343_v36 = vsub.f32 %v3409_v44, %v3571_v34  ;;  %v344_v38 = vsub.f32 %v3419_v50, %v3571_v34  ;;  %v345_v40 = vsub.f32 %v3415_v47, %v3571_v34 }
 0x12d   :  { %v346_v46 = vsub.f32 %v3427_v55, %v3571_v34  ;;  %v347_v51 = vsub.f32 %v3423_v53, %v3571_v34  ;;  %v348_v62 = vsub.f32 %v3435_v61, %v3571_v34  ;;  %v349_v6 = vsub.f32 %v3431_v59, %v3571_v34 }
 0x12e   :  { %v370_v41 = vmul.f32 %v342_v35, %v342_v35  ;;  %v371_v42 = vmul.f32 %v343_v36, %v343_v36  ;;  %v372_v49 = vmul.f32 %v344_v38, %v344_v38  ;;  %v373_v52 = vmul.f32 %v345_v40, %v345_v40 }
 0x12f   :  { %v374_v0 = vmul.f32 %v346_v46, %v346_v46  ;;  %v375_v8 = vmul.f32 %v347_v51, %v347_v51  ;;  %v350_v12 = vsub.f32 %v3443_v3, %v3571_v34  ;;  %v376_v14 = vmul.f32 %v348_v62, %v348_v62 }
 0x130   :  { %v398_v56 = vsel %vm279_vm0, %v370_v41, 0.0  ;;  %v399_v58 = vsel %vm279_vm0, %v371_v42, 0.0  ;;  %v401_v4 = vsel %vm279_vm0, %v372_v49, 0.0  ;;  %v403_v10 = vsel %vm279_vm0, %v373_v52, 0.0 }
 0x131   :  { %v400_v60 = vadd.f32 %v399_v58, %v398_v56  ;;  %v405_v17 = vsel %vm279_vm0, %v374_v0, 0.0  ;;  %v351_v23 = vsub.f32 %v3439_v1, %v3571_v34  ;;  %v377_v24 = vmul.f32 %v349_v6, %v349_v6 }
 0x132   :  { %v407_v28 = vsel %vm279_vm0, %v375_v8, 0.0  ;;  %v352_v32 = vsub.f32 %v3451_v9, %v3571_v34  ;;  %v378_v35 = vmul.f32 %v350_v12, %v350_v12  ;;  %v409_v36 = vsel %vm279_vm0, %v376_v14, 0.0 }
 0x133   :  { %v402_v5 = vadd.f32 %v401_v4, %v400_v60  ;;  %v353_v40 = vsub.f32 %v3447_v7, %v3571_v34  ;;  %v379_v41 = vmul.f32 %v351_v23, %v351_v23  ;;  %v411_v42 = vsel %vm279_vm0, %v377_v24, 0.0 }
 0x134   :  { %v354_v49 = vsub.f32 %v3459_v15, %v3571_v34  ;;  %v380_v51 = vmul.f32 %v352_v32, %v352_v32  ;;  %v413_v52 = vsel %vm279_vm0, %v378_v35, 0.0  ;;  %v355_v58 = vsub.f32 %v3455_v13, %v3571_v34 }
 0x135   :  { %v404_v11 = vadd.f32 %v403_v10, %v402_v5  ;;  %v381_v60 = vmul.f32 %v353_v40, %v353_v40  ;;  %v415_v62 = vsel %vm279_vm0, %v379_v41, 0.0  ;;  %v356_v4 = vsub.f32 %v3467_v21, %v3571_v34 }
 0x136   :  { %v382_v5 = vmul.f32 %v354_v49, %v354_v49  ;;  %v417_v6 = vsel %vm279_vm0, %v380_v51, 0.0  ;;  %v357_v10 = vsub.f32 %v3463_v19, %v3571_v34 }
 0x137   :  { %v406_v20 = vadd.f32 %v405_v17, %v404_v11  ;;  %v383_v11 = vmul.f32 %v355_v58, %v355_v58  ;;  %v419_v12 = vsel %vm279_vm0, %v381_v60, 0.0  ;;  %v358_v17 = vsub.f32 %v3475_v27, %v3571_v34 }
 0x138   :  { %v421_v23 = vsel %vm279_vm0, %v382_v5, 0.0 }
 0x139   :  { %v408_v29 = vadd.f32 %v407_v28, %v406_v20  ;;  %v384_v20 = vmul.f32 %v356_v4, %v356_v4  ;;  %v359_v28 = vsub.f32 %v3471_v25, %v3571_v34  ;;  %v423_v32 = vsel %vm279_vm0, %v383_v11, 0.0 }
 0x13b   :  { %v410_v38 = vadd.f32 %v409_v36, %v408_v29  ;;  %v385_v29 = vmul.f32 %v357_v10, %v357_v10  ;;  %v360_v36 = vsub.f32 %v3483_v33, %v3571_v34  ;;  %v425_v40 = vsel %vm279_vm0, %v384_v20, 0.0 }
 0x13d   :  { %v412_v46 = vadd.f32 %v411_v42, %v410_v38  ;;  %v386_v38 = vmul.f32 %v358_v17, %v358_v17  ;;  %v361_v42 = vsub.f32 %v3479_v31, %v3571_v34  ;;  %v427_v49 = vsel %vm279_vm0, %v385_v29, 0.0 }
 0x13f   :  { %v414_v56 = vadd.f32 %v413_v52, %v412_v46  ;;  %v387_v46 = vmul.f32 %v359_v28, %v359_v28  ;;  %v362_v52 = vsub.f32 %v3491_v39, %v3571_v34  ;;  %v429_v58 = vsel %vm279_vm0, %v386_v38, 0.0 }
 0x141   :  { %v416_v0 = vadd.f32 %v415_v62, %v414_v56  ;;  %v388_v56 = vmul.f32 %v360_v36, %v360_v36  ;;  %v363_v62 = vsub.f32 %v3487_v37, %v3571_v34  ;;  %v431_v4 = vsel %vm279_vm0, %v387_v46, 0.0 }
 0x143   :  { %v418_v8 = vadd.f32 %v417_v6, %v416_v0  ;;  %v389_v0 = vmul.f32 %v361_v42, %v361_v42  ;;  %v364_v6 = vsub.f32 %v3499_v48, %v3571_v34  ;;  %v433_v10 = vsel %vm279_vm0, %v388_v56, 0.0 }
 0x145   :  { %v420_v14 = vadd.f32 %v419_v12, %v418_v8  ;;  %v390_v8 = vmul.f32 %v362_v52, %v362_v52  ;;  %v365_v12 = vsub.f32 %v3495_v43, %v3571_v34  ;;  %v435_v17 = vsel %vm279_vm0, %v389_v0, 0.0 }
 0x147   :  { %v422_v24 = vadd.f32 %v421_v23, %v420_v14  ;;  %v391_v14 = vmul.f32 %v363_v62, %v363_v62  ;;  %v366_v23 = vsub.f32 %v3507_v57, %v3571_v34  ;;  %v437_v28 = vsel %vm279_vm0, %v390_v8, 0.0 }
 0x149   :  { %v424_v35 = vadd.f32 %v423_v32, %v422_v24  ;;  %v392_v24 = vmul.f32 %v364_v6, %v364_v6  ;;  %v367_v32 = vsub.f32 %v3503_v54, %v3571_v34  ;;  %v439_v36 = vsel %vm279_vm0, %v391_v14, 0.0 }
 0x14b   :  { %v426_v41 = vadd.f32 %v425_v40, %v424_v35  ;;  %v393_v35 = vmul.f32 %v365_v12, %v365_v12  ;;  %v368_v40 = vsub.f32 %v3515_v2, %v3571_v34  ;;  %v441_v42 = vsel %vm279_vm0, %v392_v24, 0.0 }
 0x14d   :  { %v428_v51 = vadd.f32 %v427_v49, %v426_v41  ;;  %v394_v41 = vmul.f32 %v366_v23, %v366_v23  ;;  %v369_v49 = vsub.f32 %v3511_v63, %v3571_v34  ;;  %v443_v52 = vsel %vm279_vm0, %v393_v35, 0.0 }
 0x14e   :  { %v459_v23 = vmul.f32 24.0, %v3571_v34 }
 0x14f   :  { %v430_v60 = vadd.f32 %v429_v58, %v428_v51  ;;  %v395_v51 = vmul.f32 %v367_v32, %v367_v32  ;;  %v396_v58 = vmul.f32 %v368_v40, %v368_v40  ;;  %v397_v0 = vmul.f32 %v369_v49, %v369_v49 }
 0x150   :  { %v471_v40 = vlaneseq }
 0x151   :  { %v432_v5 = vadd.f32 %v431_v4, %v430_v60  ;;  %v445_v60 = vsel %vm279_vm0, %v394_v41, 0.0  ;;  %v447_v4 = vsel %vm279_vm0, %v395_v51, 0.0  ;;  %v449_v6 = vsel %vm279_vm0, %v396_v58, 0.0 }
 0x152   :  { %v3659_v41 = vshrl.u32 %v471_v40, 7 }
 0x153   :  { %v434_v11 = vadd.f32 %v433_v10, %v432_v5  ;;  %v451_v10 = vsel %vm279_vm0, %v397_v0, 0.0 }
 0x154   :  { %vm597_vm2 = vcmp.lt.s32.totalorder %v3659_v41, 7  ;;  %vm1007_vm3 = vcmp.lt.s32.totalorder %v3659_v41, 3  ;;  %vm1303_vm4 = vcmp.lt.s32.totalorder %v3659_v41, 1  ;;  %vm1155_vm5 = vcmp.lt.s32.totalorder %v3659_v41, 2 }
 0x155   :  { %v436_v20 = vadd.f32 %v435_v17, %v434_v11  ;;  %vm1711_vm6 = vcmp.lt.s32.totalorder %v3659_v41, 4  ;;  %vm1563_vm7 = vcmp.lt.s32.totalorder %v3659_v41, 5  ;;  %vm859_vm8 = vcmp.lt.s32.totalorder %v3659_v41, 6 }
 0x157   :  { %v438_v29 = vadd.f32 %v437_v28, %v436_v20 }
 0x159   :  { %v440_v38 = vadd.f32 %v439_v36, %v438_v29  ;;  %v460_v29 = vmul.f32 %v459_v23, %v3571_v34 }
 0x15b   :  { %v442_v46 = vadd.f32 %v441_v42, %v440_v38  ;;  %v463_v42 = vld [vmem:[%s4674_s3] sm:$0x1] }
 0x15d   :  { %v444_v56 = vadd.f32 %v443_v52, %v442_v46  ;;  %v3665_v46 = vsub.s32 0, %v3659_v41  ;;  %v468_v52 = vld [vmem:[%s4674_s3 + $0x1] sm:$0x1]  ;;  %v2584_v41 = vld [vmem:[%s4676_s5 + $0x50] sm:$0xff] }
 0x15f   :  { %v446_v62 = vadd.f32 %v445_v60, %v444_v56 }
 0x161   :  { %v448_v5 = vadd.f32 %v447_v4, %v446_v62 }
 0x163   :  { %v450_v8 = vadd.f32 %v449_v6, %v448_v5 }
 0x165   :  { %v452_v11 = vadd.f32 %v451_v10, %v450_v8 }
 0x167   :  { %v453_v12 = vrot.slane %v452_v11, 4 }
 0x169   :  { %v454_v14 = vadd.f32 %v453_v12, %v452_v11 }
 0x16b   :  { %v455_v17 = vrot.slane %v454_v14, 2 }
 0x16d   :  { %v456_v20 = vadd.f32 %v455_v17, %v454_v14 }
 0x16f   :  { %v457_v24 = vrot.slane %v456_v20, 1 }
 0x171   :  { %v458_v28 = vadd.f32 %v457_v24, %v456_v20 }
 0x173   :  { %v461_v32 = vsub.f32 %v458_v28, %v460_v29 }
 0x175   :  { %v462_v35 = vmul.f32 0.005, %v461_v32 }
 0x177   :  { %v464_v36 = vmax.f32 %v462_v35, 0.0 }
 0x179   :  { %v465_v38 = vadd.f32 1e-05, %v464_v36 }
 0x17b   :  { %3202 = vrsqrt.f32 %v465_v38 }
 0x188   :  { %v3203_v49 = vpop.eup %3202 }
 0x189   :  { %v467_v51 = vmul.f32 %v3203_v49, %v463_v42 }
 0x18b   :  { %v469_v56 = vmul.f32 %v467_v51, %v3571_v34  ;;  %v3672_v58 = vrot.slane %v467_v51, %v3665_v46 }
 0x18d   :  { %v470_v60 = vsub.f32 %v468_v52, %v469_v56  ;;  %v480_v62 = vmul.f32 %v3423_v53, %v3672_v58  ;;  %v487_v0 = vmul.f32 %v3672_v58, %v3459_v15  ;;  %v494_v4 = vmul.f32 %v3479_v31, %v3672_v58 }
 0x18e   :  { %v501_v5 = vmul.f32 %v3672_v58, %v3515_v2  ;;  %v475_v6 = vmul.f32 %v3672_v58, %v3411_v45  ;;  %v476_v34 = vmul.f32 %v3409_v44, %v3672_v58  ;;  %v482_v53 = vmul.f32 %v3431_v59, %v3672_v58 }
 0x18f   :  { %v3687_v8 = vrot.slane %v470_v60, %v3665_v46  ;;  %v483_v15 = vmul.f32 %v3672_v58, %v3443_v3  ;;  %v489_v31 = vmul.f32 %v3672_v58, %v3467_v21  ;;  %v490_v2 = vmul.f32 %v3463_v19, %v3672_v58 }
 0x190   :  { %v496_v45 = vmul.f32 %v3487_v37, %v3672_v58  ;;  %v497_v44 = vmul.f32 %v3672_v58, %v3499_v48  ;;  %v477_v10 = vmul.f32 %v3672_v58, %v3419_v50  ;;  %v484_v38 = vmul.f32 %v3439_v1, %v3672_v58 }
 0x191   :  { %v512_v59 = vadd.f32 %v3687_v8, %v480_v62  ;;  %v519_v11 = vadd.f32 %v3687_v8, %v487_v0  ;;  %v526_v3 = vadd.f32 %v3687_v8, %v494_v4  ;;  %v533_v21 = vadd.f32 %v3687_v8, %v501_v5 }
 0x192   :  { %v507_v12 = vadd.f32 %v3687_v8, %v475_v6  ;;  %v508_v19 = vadd.f32 %v3687_v8, %v476_v34  ;;  %v514_v37 = vadd.f32 %v3687_v8, %v482_v53  ;;  %v515_v14 = vadd.f32 %v3687_v8, %v483_v15 }
 0x193   :  { %v540_v48 = vmax.f32 %v512_v59, 0.0  ;;  %v547_v17 = vmax.f32 %v519_v11, 0.0  ;;  %v554_v20 = vmax.f32 %v526_v3, 0.0  ;;  %v561_v50 = vmax.f32 %v533_v21, 0.0 }
 0x194   :  { %v521_v23 = vadd.f32 %v3687_v8, %v489_v31  ;;  %v522_v24 = vadd.f32 %v3687_v8, %v490_v2  ;;  %v528_v28 = vadd.f32 %v3687_v8, %v496_v45  ;;  %v529_v29 = vadd.f32 %v3687_v8, %v497_v44 }
 0x195   :  { %v3717_v32 = vmax.f32 %v540_v48, %v547_v17  ;;  %v535_v35 = vmax.f32 %v507_v12, 0.0  ;;  %v536_v36 = vmax.f32 %v508_v19, 0.0  ;;  %v542_v40 = vmax.f32 %v514_v37, 0.0 }
 0x196   :  { %v543_v42 = vmax.f32 %v515_v14, 0.0  ;;  %v549_v49 = vmax.f32 %v521_v23, 0.0  ;;  %v550_v51 = vmax.f32 %v522_v24, 0.0  ;;  %v3721_v52 = vmax.f32 %v554_v20, %v561_v50  ;;  %v587_v14 = vld [vmem:[%s4673_s2 + $0x18] sm:$0xff] }
 0x197   :  { %v556_v56 = vmax.f32 %v528_v28, 0.0  ;;  %v557_v60 = vmax.f32 %v529_v29, 0.0  ;;  %v491_v62 = vmul.f32 %v3672_v58, %v3475_v27  ;;  %v563_v0 = vmax.f32 %v535_v35, %v542_v40  ;;  %v586_v29 = vld [vmem:[%s4673_s2 + $0x10] sm:$0xff] }
 0x198   :  { %v564_v4 = vmax.f32 %v536_v36, %v543_v42  ;;  %v498_v5 = vmul.f32 %v3495_v43, %v3672_v58  ;;  %v509_v6 = vadd.f32 %v3687_v8, %v477_v10  ;;  %v516_v53 = vadd.f32 %v3687_v8, %v484_v38  ;;  %v2535_v38 = vld [vmem:[%s4673_s2 + $0xb8] sm:$0xff] }
 0x199   :  { %v570_v34 = vmax.f32 %v549_v49, %v556_v56  ;;  %v571_v1 = vmax.f32 %v550_v51, %v557_v60  ;;  %v523_v15 = vadd.f32 %v3687_v8, %v491_v62  ;;  %v478_v45 = vmul.f32 %v3415_v47, %v3672_v58 }
 0x19a   :  { %v530_v31 = vadd.f32 %v3687_v8, %v498_v5  ;;  %v537_v2 = vmax.f32 %v509_v6, 0.0  ;;  %v485_v27 = vmul.f32 %v3672_v58, %v3451_v9  ;;  %v544_v10 = vmax.f32 %v516_v53, 0.0  ;;  %v2534_v6 = vld [vmem:[%s4673_s2 + $0xb0] sm:$0xff]  ;;  %v585_v53 = vld [vmem:[%s4673_s2 + $0x8] sm:$0xff] }
 0x19b   :  { %v3735_v44 = vmax.f32 %v563_v0, %v570_v34  ;;  %v3737_v43 = vmax.f32 %v564_v4, %v571_v1  ;;  %v551_v59 = vmax.f32 %v523_v15, 0.0  ;;  %v492_v3 = vmul.f32 %v3471_v25, %v3672_v58 }
 0x19c   :  { %v558_v11 = vmax.f32 %v530_v31, 0.0  ;;  %v499_v21 = vmul.f32 %v3672_v58, %v3507_v57  ;;  %v510_v12 = vadd.f32 %v3687_v8, %v478_v45  ;;  %v565_v48 = vmax.f32 %v537_v2, %v544_v10 }
 0x19d   :  { %v588_v47 = vrot.slane %v3735_v44, 1  ;;  %v589_v19 = vrot.slane %v3737_v43, 1  ;;  %v1000_v9 = vrot.slane %v3735_v44, 5  ;;  %v1001_v37 = vrot.slane %v3737_v43, 5 }
 0x19e   :  { %v572_v17 = vmax.f32 %v551_v59, %v558_v11  ;;  %v517_v25 = vadd.f32 %v3687_v8, %v485_v27  ;;  %v524_v57 = vadd.f32 %v3687_v8, %v492_v3  ;;  %v531_v23 = vadd.f32 %v3687_v8, %v499_v21  ;;  %v2533_v27 = vld [vmem:[%s4673_s2 + $0xa8] sm:$0xff] }
 0x19f   :  { %v603_v20 = vsel %vm597_vm2, %v588_v47, %v589_v19  ;;  %v1013_v50 = vsel %vm1007_vm3, %v1000_v9, %v1001_v37  ;;  %v538_v24 = vmax.f32 %v510_v12, 0.0  ;;  %v479_v40 = vmul.f32 %v3672_v58, %v3427_v55 }
 0x1a0   :  { %2857 = vmatmul.mubr.msk.f32.vlgmr.msra.gmra.mxu1 %vm279_vm0, %v603_v20  ;;  %2944 = vmatmul.mubr.msk.f32.vlgmr.msra.gmra.mxu0 %vm279_vm0, %v1013_v50  ;;  %v3764_v28 = vmax.f32 %v565_v48, %v572_v17  ;;  %v545_v35 = vmax.f32 %v517_v25, 0.0  ;;  %v552_v36 = vmax.f32 %v524_v57, 0.0  ;;  %v559_v42 = vmax.f32 %v531_v23, 0.0  ;;  %v584_v25 = vld [vmem:[%s4673_s2] sm:$0xff] }
 0x1a1   :  { %2878 = vmatpush3.msra.mxu1 %v587_v14  ;;  %2859 = vmatprep.mubr.msk.f32.mxu1 %vm3229_vm1, %v3228_v18  ;;  %v486_v49 = vmul.f32 %v3447_v7, %v3672_v58  ;;  %v493_v51 = vmul.f32 %v3672_v58, %v3483_v33  ;;  %v500_v56 = vmul.f32 %v3503_v54, %v3672_v58 }
 0x1a2   :  { %2946 = vmatprep.mubr.msk.f32.mxu0 %vm3229_vm1, %v3228_v18  ;;  %v590_v60 = vrot.slane %v3764_v28, 1  ;;  %v1002_v55 = vrot.slane %v3764_v28, 5  ;;  %2879 = vmatprep.subr.mxu1 %v3228_v18  ;;  %v566_v62 = vmax.f32 %v538_v24, %v545_v35  ;;  %v511_v0 = vadd.f32 %v3687_v8, %v479_v40 }
 0x1a3   :  { %2880 = vmatpush3.msra.mxu1 %v586_v29  ;;  %v573_v7 = vmax.f32 %v552_v36, %v559_v42  ;;  %2994 = vmatpush3.msra.mxu0 %v2535_v38  ;;  %v518_v33 = vadd.f32 %v3687_v8, %v486_v49  ;;  %v525_v4 = vadd.f32 %v3687_v8, %v493_v51  ;;  %v1296_v29 = vrot.slane %v3735_v44, 7 }
 0x1a4   :  { %v602_v54 = vsel %vm597_vm2, %v589_v19, %v590_v60  ;;  %v1012_v5 = vsel %vm1007_vm3, %v1001_v37, %v1002_v55  ;;  %2995 = vmatprep.subr.mxu0 %v3228_v18  ;;  %v532_v34 = vadd.f32 %v3687_v8, %v500_v56  ;;  %v539_v1 = vmax.f32 %v511_v0, 0.0  ;;  %2881 = vmatprep.subr.mxu1 %v3228_v18 }
 0x1a5   :  { %2860 = vmatmul.mubr.msk.f32.gmra.mxu1 %vm279_vm0, %v602_v54  ;;  %2947 = vmatmul.mubr.msk.f32.gmra.mxu0 %vm279_vm0, %v1012_v5  ;;  %v3805_v15 = vmax.f32 %v566_v62, %v573_v7  ;;  %v546_v31 = vmax.f32 %v518_v33, 0.0  ;;  %v553_v2 = vmax.f32 %v525_v4, 0.0  ;;  %v481_v10 = vmul.f32 %v3672_v58, %v3435_v61  ;;  %v2557_v62 = vld [vmem:[%s4673_s2 + $0xf8] sm:$0xff]  ;;  %v2556_v54 = vld [vmem:[%s4673_s2 + $0xf0] sm:$0xff] }
 0x1a6   :  { %2862 = vmatprep.mubr.msk.f32.mxu1 %vm3229_vm1, %v3228_v18  ;;  %2949 = vmatprep.mubr.msk.f32.mxu0 %vm3229_vm1, %v3228_v18  ;;  %v560_v45 = vmax.f32 %v532_v34, 0.0  ;;  %v488_v59 = vmul.f32 %v3455_v13, %v3672_v58  ;;  %v495_v12 = vmul.f32 %v3672_v58, %v3491_v39  ;;  %v3824_v19 = vmax.f32 %v3717_v32, %v3721_v52 }
 0x1a7   :  { %v591_v11 = vrot.slane %v3805_v15, 1  ;;  %v1003_v3 = vrot.slane %v3805_v15, 5  ;;  %2996 = vmatpush3.msra.mxu0 %v2534_v6  ;;  %v567_v21 = vmax.f32 %v539_v1, %v546_v31  ;;  %2882 = vmatpush3.msra.mxu1 %v585_v53  ;;  %v502_v61 = vmul.f32 %v3511_v63, %v3672_v58  ;;  %v2532_v63 = vld [vmem:[%s4673_s2 + $0xa0] sm:$0xff] }
 0x1a8   :  { %v574_v37 = vmax.f32 %v553_v2, %v560_v45  ;;  %2997 = vmatprep.subr.mxu0 %v3228_v18  ;;  %v513_v13 = vadd.f32 %v3687_v8, %v481_v10  ;;  %v520_v39 = vadd.f32 %v3687_v8, %v488_v59  ;;  %v527_v32 = vadd.f32 %v3687_v8, %v495_v12 }
 0x1a9   :  { %v601_v14 = vsel %vm597_vm2, %v590_v60, %v591_v11  ;;  %v1011_v48 = vsel %vm1007_vm3, %v1002_v55, %v1003_v3  ;;  %2998 = vmatpush3.msra.mxu0 %v2533_v27  ;;  %v534_v58 = vadd.f32 %v3687_v8, %v502_v61  ;;  %2883 = vmatprep.subr.mxu1 %v3228_v18  ;;  %v593_v24 = vrot.slane %v3824_v19, 1 }
 0x1aa   :  { %2863 = vmatmul.mubr.msk.f32.gmra.mxu1 %vm279_vm0, %v601_v14  ;;  %2950 = vmatmul.mubr.msk.f32.gmra.mxu0 %vm279_vm0, %v1011_v48  ;;  %v3838_v52 = vmax.f32 %v567_v21, %v574_v37  ;;  %v541_v17 = vmax.f32 %v513_v13, 0.0  ;;  %v548_v57 = vmax.f32 %v520_v39, 0.0  ;;  %v555_v20 = vmax.f32 %v527_v32, 0.0 }
 0x1ab   :  { %2865 = vmatprep.mubr.msk.f32.mxu1 %vm3229_vm1, %v3228_v18  ;;  %2952 = vmatprep.mubr.msk.f32.mxu0 %vm3229_vm1, %v3228_v18  ;;  %v562_v8 = vmax.f32 %v534_v58, 0.0  ;;  %v1297_v40 = vrot.slane %v3737_v43, 7  ;;  %v1298_v55 = vrot.slane %v3764_v28, 7  ;;  %v1299_v0 = vrot.slane %v3805_v15, 7  ;;  %v2502_v58 = vld [vmem:[%s4673_s2 + $0x58] sm:$0xff] }
 0x1ac   :  { %v592_v50 = vrot.slane %v3838_v52, 1  ;;  %v1004_v23 = vrot.slane %v3838_v52, 5  ;;  %2999 = vmatprep.subr.mxu0 %v3228_v18  ;;  %v569_v35 = vmax.f32 %v541_v17, %v548_v57  ;;  %2884 = vmatpush3.msra.mxu1 %v584_v25  ;;  %v1300_v7 = vrot.slane %v3838_v52, 7 }
 0x1ad   :  { %3000 = vmatpush3.msra.mxu0 %v2532_v63  ;;  %v576_v42 = vmax.f32 %v555_v20, %v562_v8  ;;  %2906 = vmatprep.subr.mxu1 %v3228_v18  ;;  %v1309_v56 = vsel %vm1303_vm4, %v1296_v29, %v1297_v40  ;;  %v1308_v4 = vsel %vm1303_vm4, %v1297_v40, %v1298_v55  ;;  %v1301_v5 = vrot.slane %v3824_v19, 7 }
 0x1ae   :  { %v600_v36 = vsel %vm597_vm2, %v591_v11, %v592_v50  ;;  %v1010_v38 = vsel %vm1007_vm3, %v1003_v3, %v1004_v23  ;;  %3051 = vmatprep.subr.mxu0 %v3228_v18  ;;  %v599_v51 = vsel %vm597_vm2, %v592_v50, %v593_v24  ;;  %v1005_v6 = vrot.slane %v3824_v19, 5  ;;  %v2555_v11 = vld [vmem:[%s4673_s2 + $0xe8] sm:$0xff] }
 0x1af   :  { %2866 = vmatmul.mubr.msk.f32.gmra.mxu1 %vm279_vm0, %v600_v36  ;;  %2953 = vmatmul.mubr.msk.f32.gmra.mxu0 %vm279_vm0, %v1010_v38  ;;  %v3870_v49 = vmax.f32 %v569_v35, %v576_v42  ;;  %v1148_v1 = vrot.slane %v3735_v44, 6  ;;  %v1307_v31 = vsel %vm1303_vm4, %v1298_v55, %v1299_v0  ;;  %v1306_v2 = vsel %vm1303_vm4, %v1299_v0, %v1300_v7  ;;  %v2501_v35 = vld [vmem:[%s4673_s2 + $0x50] sm:$0xff]  ;;  %v2554_v36 = vld [vmem:[%s4673_s2 + $0xe0] sm:$0xff] }
 0x1b0   :  { %2868 = vmatprep.mubr.msk.f32.mxu1 %vm3229_vm1, %v3228_v18  ;;  %3001 = vmatprep.mubr.msk.f32.mxu0 %vm3229_vm1, %v3228_v18  ;;  %v1149_v45 = vrot.slane %v3737_v43, 6  ;;  %v3925_v27 = vsel %vm1007_vm3, %v1004_v23, %v1005_v6  ;;  %v1150_v59 = vrot.slane %v3764_v28, 6  ;;  %v1151_v21 = vrot.slane %v3805_v15, 6 }
 0x1b1   :  { %v594_v60 = vrot.slane %v3870_v49, 1  ;;  %v1006_v34 = vrot.slane %v3870_v49, 5  ;;  %v1152_v12 = vrot.slane %v3838_v52, 6  ;;  %v1153_v37 = vrot.slane %v3824_v19, 6 }
 0x1b2   :  { %v3944_v3 = vsel %vm1155_vm5, %v1148_v1, %v1149_v45  ;;  %v1154_v61 = vrot.slane %v3870_v49, 6  ;;  %v1705_v13 = vrot.slane %v3737_v43, 4  ;;  %v1706_v14 = vrot.slane %v3764_v28, 4 }
 0x1b3   :  { %2869 = vmatmul.mubr.msk.f32.gmra.mxu1 %vm279_vm0, %v599_v51  ;;  %3002 = vmatmul.mubr.msk.f32.vlgmr.msra.gmra.mxu0 %vm279_vm0, %v1309_v56  ;;  %v598_v33 = vsel %vm597_vm2, %v593_v24, %v594_v60  ;;  %v604_v53 = vsel %vm597_vm2, %v594_v60, %v588_v47  ;;  %v3929_v10 = vsel %vm1007_vm3, %v1005_v6, %v1006_v34  ;;  %v1707_v63 = vrot.slane %v3805_v15, 4 }
 0x1b4   :  { %2871 = vmatprep.mubr.msk.f32.mxu1 %vm3229_vm1, %v3228_v18  ;;  %3004 = vmatprep.mubr.msk.f32.mxu0 %vm3229_vm1, %v3228_v18  ;;  %v3935_v47 = vsel %vm1007_vm3, %v1006_v34, %v1000_v9  ;;  %v3953_v9 = vsel %vm1155_vm5, %v1149_v45, %v1150_v59  ;;  %v3964_v48 = vsel %vm1155_vm5, %v1150_v59, %v1151_v21  ;;  %v1708_v20 = vrot.slane %v3838_v52, 4 }
 0x1b5   :  { %3052 = vmatpush3.msra.mxu0 %v2557_v62  ;;  %v3968_v39 = vsel %vm1155_vm5, %v1151_v21, %v1152_v12  ;;  %v3972_v32 = vsel %vm1155_vm5, %v1152_v12, %v1153_v37  ;;  %v3980_v17 = vsel %vm1155_vm5, %v1153_v37, %v1154_v61  ;;  %v3984_v25 = vsel %vm1155_vm5, %v1154_v61, %v1148_v1  ;;  %v2500_v62 = vld [vmem:[%s4673_s2 + $0x48] sm:$0xff] }
 0x1b6   :  { %3053 = vmatprep.subr.mxu0 %v3228_v18  ;;  %v3988_v57 = vsel %vm1711_vm6, %v1705_v13, %v1706_v14  ;;  %v3994_v50 = vsel %vm1711_vm6, %v1706_v14, %v1707_v63  ;;  %v1709_v23 = vrot.slane %v3824_v19, 4  ;;  %v1710_v8 = vrot.slane %v3870_v49, 4  ;;  %v2523_v14 = vld [vmem:[%s4673_s2 + $0x90] sm:$0xff] }
 0x1b7   :  { %2872 = vmatmul.mubr.msk.f32.gmra.mxu1 %vm279_vm0, %v598_v33  ;;  %3005 = vmatmul.mubr.msk.f32.gmra.mxu0 %vm279_vm0, %v1308_v4  ;;  %v1704_v24 = vrot.slane %v3735_v44, 4  ;;  %v4010_v38 = vsel %vm1711_vm6, %v1707_v63, %v1708_v20  ;;  %v1305_v60 = vsel %vm1303_vm4, %v1300_v7, %v1301_v5  ;;  %v1302_v55 = vrot.slane %v3870_v49, 7  ;;  %v2499_v7 = vld [vmem:[%s4673_s2 + $0x40] sm:$0xff]  ;;  %v2522_v63 = vld [vmem:[%s4673_s2 + $0x88] sm:$0xff] }
 0x1b8   :  { %2874 = vmatprep.mubr.msk.f32.mxu1 %vm3229_vm1, %v3228_v18  ;;  %3007 = vmatprep.mubr.msk.f32.mxu0 %vm3229_vm1, %v3228_v18  ;;  %v4016_v40 = vsel %vm1711_vm6, %v1708_v20, %v1709_v23  ;;  %v4020_v42 = vsel %vm1711_vm6, %v1709_v23, %v1710_v8  ;;  %v1557_v4 = vrot.slane %v3737_v43, 3  ;;  %v1560_v34 = vrot.slane %v3838_v52, 3  ;;  %v2546_v20 = vld [vmem:[%s4673_s2 + $0xd8] sm:$0xff]  ;;  %v1853_v23 = vld [vmem:[%s4675_s4 + $0x8] sm:$0xff] }
 0x1b9   :  { %3054 = vmatpush3.msra.mxu0 %v2556_v54  ;;  %v4024_v51 = vsel %vm1711_vm6, %v1710_v8, %v1704_v24  ;;  %v4031_v56 = vsel %vm1711_vm6, %v1704_v24, %v1705_v13  ;;  %v1304_v0 = vsel %vm1303_vm4, %v1301_v5, %v1302_v55  ;;  %v1310_v33 = vsel %vm1303_vm4, %v1302_v55, %v1296_v29  ;;  %v2544_v8 = vld [vmem:[%s4673_s2 + $0xc8] sm:$0xff]  ;;  %v1854_v24 = vld [vmem:[%s4675_s4 + $0x10] sm:$0xff] }
 0x1ba   :  { %3055 = vmatprep.subr.mxu0 %v3228_v18  ;;  %v1558_v54 = vrot.slane %v3764_v28, 3  ;;  %v1559_v5 = vrot.slane %v3805_v15, 3  ;;  %v854_v59 = vrot.slane %v3764_v28, 2  ;;  %v855_v12 = vrot.slane %v3805_v15, 2 }
 0x1bb   :  { %2875 = vmatmul.mubr.msk.f32.gmra.mxu1 %vm279_vm0, %v604_v53  ;;  %3008 = vmatmul.mubr.msk.f32.gmra.mxu0 %vm279_vm0, %v1307_v31  ;;  %v852_v53 = vrot.slane %v3735_v44, 2  ;;  %v853_v31 = vrot.slane %v3737_v43, 2 }
 0x1bc   :  { %2885 = vmatprep.mubr.msk.f32.mxu1 %vm3229_vm1, %v3228_v18  ;;  %3010 = vmatprep.mubr.msk.f32.mxu0 %vm3229_vm1, %v3228_v18  ;;  %v1568_v29 = vsel %vm1563_vm7, %v1557_v4, %v1558_v54  ;;  %v1567_v6 = vsel %vm1563_vm7, %v1558_v54, %v1559_v5  ;;  %v1566_v1 = vsel %vm1563_vm7, %v1559_v5, %v1560_v34 }
 0x1bd   :  { %3056 = vmatpush3.msra.mxu0 %v2555_v11  ;;  %v4117_v45 = vsel %vm859_vm8, %v852_v53, %v853_v31  ;;  %v1562_v11 = vrot.slane %v3870_v49, 3 }
 0x1be   :  { %3057 = vmatprep.subr.mxu0 %v3228_v18 }
 0x1bf   :  { %2886 = vmatmul.mubr.msk.f32.vlgmr.msra.gmra.mxu1 %vm279_vm0, %v3735_v44  ;;  %3011 = vmatmul.mubr.msk.f32.gmra.mxu0 %vm279_vm0, %v1306_v2  ;;  %v1561_v2 = vrot.slane %v3824_v19, 3 }
 0x1c0   :  { %2907 = vmatpush3.msra.mxu1 %v2502_v58  ;;  %2888 = vmatprep.mubr.msk.f32.mxu1 %vm3229_vm1, %v3228_v18  ;;  %v3230_v58 = vmov 0  }
 0x1c1   :  { %3013 = vmatprep.mubr.msk.f32.mxu0 %vm3229_vm1, %v3228_v18  ;;  %2908 = vmatprep.subr.mxu1 %v3228_v18  ;;  %v1564_v21 = vsel %vm1563_vm7, %v1561_v2, %v1562_v11 }
 0x1c2   :  { %2909 = vmatpush3.msra.mxu1 %v2501_v35  ;;  %3058 = vmatpush3.msra.mxu0 %v2554_v36  ;;  %v1856_v35 = vld [vmem:[%s4675_s4 + $0x20] sm:$0xff]  ;;  %v1858_v36 = vld [vmem:[%s4675_s4 + $0x30] sm:$0xff] }
 0x1c3   :  { %2889 = vmatmul.mubr.msk.f32.gmra.mxu1 %vm279_vm0, %v3737_v43  ;;  %3014 = vmatmul.mubr.msk.f32.gmra.mxu0 %vm279_vm0, %v1305_v60  ;;  %v1565_v43 = vsel %vm1563_vm7, %v1560_v34, %v1561_v2 }
 0x1c4   :  { %2891 = vmatprep.mubr.msk.f32.mxu1 %vm3229_vm1, %v3228_v18  ;;  %3016 = vmatprep.mubr.msk.f32.mxu0 %vm3229_vm1, %v3228_v18 }
 0x1c5   :  { %2910 = vmatprep.subr.mxu1 %v3228_v18  ;;  %3109 = vmatprep.subr.mxu0 %v3228_v18 }
 0x1c6   :  { %2911 = vmatpush3.msra.mxu1 %v2500_v62  ;;  %3200 = vset.pattern.permute.xlu0 %v3230_v58 }
 0x1c7   :  { %2892 = vmatmul.mubr.msk.f32.gmra.mxu1 %vm279_vm0, %v3764_v28  ;;  %3017 = vmatmul.mubr.msk.f32.gmra.mxu0 %vm279_vm0, %v1304_v0  ;;  %v4134_v28 = vsel %vm859_vm8, %v853_v31, %v854_v59 }
 0x1c8   :  { %2894 = vmatprep.mubr.msk.f32.mxu1 %vm3229_vm1, %v3228_v18  ;;  %3019 = vmatprep.mubr.msk.f32.mxu0 %vm3229_vm1, %v3228_v18 }
 0x1c9   :  { %2912 = vmatprep.subr.mxu1 %v3228_v18  ;;  %3201 = vset.pattern.permute.xlu1 %v3230_v58 }
 0x1ca   :  { %2913 = vmatpush3.msra.mxu1 %v2499_v7  ;;  %1871 = vperm.xlu1 %3201, %v1854_v24  }
 0x1cb   :  { %2895 = vmatmul.mubr.msk.f32.gmra.mxu1 %vm279_vm0, %v3805_v15  ;;  %3020 = vmatmul.mubr.msk.f32.gmra.mxu0 %vm279_vm0, %v1310_v33  ;;  %v856_v15 = vrot.slane %v3838_v52, 2 }
 0x1cc   :  { %2897 = vmatprep.mubr.msk.f32.mxu1 %vm3229_vm1, %v3228_v18  ;;  %3059 = vmatprep.mubr.msk.f32.mxu0 %vm3229_vm1, %v3228_v18 }
 0x1cd   :  { %3188 = vmatprep.subr.mxu1 %v3228_v18  ;;  %v4167_v37 = vsel %vm859_vm8, %v855_v12, %v856_v15 }
 0x1cf   :  { %2898 = vmatmul.mubr.msk.f32.gmra.mxu1 %vm279_vm0, %v3838_v52  ;;  %3060 = vmatmul.mubr.msk.f32.vlgmr.msra.gmra.mxu0 %vm279_vm0, %v1568_v29  ;;  %v857_v52 = vrot.slane %v3824_v19, 2 }
 0x1d0   :  { %2900 = vmatprep.mubr.msk.f32.mxu1 %vm3229_vm1, %v3228_v18  ;;  %3062 = vmatprep.mubr.msk.f32.mxu0 %vm3229_vm1, %v3228_v18 }
 0x1d1   :  { %v4183_v61 = vsel %vm859_vm8, %v856_v15, %v857_v52 }
 0x1d3   :  { %2901 = vmatmul.mubr.msk.f32.gmra.mxu1 %vm279_vm0, %v3824_v19  ;;  %3063 = vmatmul.mubr.msk.f32.gmra.mxu0 %vm279_vm0, %v1567_v6  ;;  %v858_v19 = vrot.slane %v3870_v49, 2 }
 0x1d4   :  { %2903 = vmatprep.mubr.msk.f32.mxu1 %vm3229_vm1, %v3228_v18  ;;  %3065 = vmatprep.mubr.msk.f32.mxu0 %vm3229_vm1, %v3228_v18 }
 0x1d5   :  { %v4200_v13 = vsel %vm859_vm8, %v858_v19, %v852_v53 }
 0x1d7   :  { %2904 = vmatmul.mubr.msk.f32.gmra.mxu1 %vm279_vm0, %v3870_v49  ;;  %3066 = vmatmul.mubr.msk.f32.gmra.mxu0 %vm279_vm0, %v1566_v1  ;;  %v2524_v49 = vld [vmem:[%s4673_s2 + $0x98] sm:$0xff] }
 0x1d8   :  { %2914 = vmatprep.mubr.msk.f32.mxu1 %vm3229_vm1, %v3228_v18  ;;  %3068 = vmatprep.mubr.msk.f32.mxu0 %vm3229_vm1, %v3228_v18 }
 0x1db   :  { %2915 = vmatmul.mubr.msk.f32.vlgmr.msra.gmra.mxu1 %vm279_vm0, %v4117_v45  ;;  %3069 = vmatmul.mubr.msk.f32.gmra.mxu0 %vm279_vm0, %v1565_v43 }
 0x1dc   :  { %3192 = vmatpush3.msra.mxu1 %v3527_v16  ;;  %2917 = vmatprep.mubr.msk.f32.mxu1 %vm3229_vm1, %v3228_v18  ;;  %v1556_v16 = vrot.slane %v3735_v44, 3 }
 0x1dd   :  { %3071 = vmatprep.mubr.msk.f32.mxu0 %vm3229_vm1, %v3228_v18  ;;  %3189 = vmatprep.subr.mxu1 %v3228_v18 }
 0x1de   :  { %3193 = vmatpush3.msra.mxu1 %v3537_v22  ;;  %v4151_v22 = vsel %vm859_vm8, %v854_v59, %v855_v12  ;;  %v1570_v44 = vsel %vm1563_vm7, %v1562_v11, %v1556_v16 }
 0x1df   :  { %2918 = vmatmul.mubr.msk.f32.gmra.mxu1 %vm279_vm0, %v4134_v28  ;;  %3072 = vmatmul.mubr.msk.f32.gmra.mxu0 %vm279_vm0, %v1564_v21 }
 0x1e0   :  { %2920 = vmatprep.mubr.msk.f32.mxu1 %vm3229_vm1, %v3228_v18  ;;  %3074 = vmatprep.mubr.msk.f32.mxu0 %vm3229_vm1, %v3228_v18 }
 0x1e1   :  { %3190 = vmatprep.subr.mxu1 %v3228_v18 }
 0x1e2   :  { %3194 = vmatpush3.msra.mxu1 %v3548_v26  ;;  %v1569_v26 = vsel %vm1563_vm7, %v1556_v16, %v1557_v4 }
 0x1e3   :  { %2921 = vmatmul.mubr.msk.f32.gmra.mxu1 %vm279_vm0, %v4151_v22  ;;  %3075 = vmatmul.mubr.msk.f32.gmra.mxu0 %vm279_vm0, %v1570_v44 }
 0x1e4   :  { %2923 = vmatprep.mubr.msk.f32.mxu1 %vm3229_vm1, %v3228_v18  ;;  %3077 = vmatprep.mubr.msk.f32.mxu0 %vm3229_vm1, %v3228_v18 }
 0x1e5   :  { %3191 = vmatprep.subr.mxu1 %v3228_v18 }
 0x1e6   :  { %3195 = vmatpush3.msra.mxu1 %v3560_v30  ;;  %v4192_v30 = vsel %vm859_vm8, %v857_v52, %v858_v19 }
 0x1e7   :  { %2924 = vmatmul.mubr.msk.f32.gmra.mxu1 %vm279_vm0, %v4167_v37  ;;  %3078 = vmatmul.mubr.msk.f32.gmra.mxu0 %vm279_vm0, %v1569_v26 }
 0x1e8   :  { %2926 = vmatprep.mubr.msk.f32.mxu1 %vm3229_vm1, %v3228_v18  ;;  %2964 = vmatprep.subr.mxu1 %v3228_v18 }
 0x1e9   :  { %3117 = vmatprep.mubr.msk.f32.mxu0 %vm3229_vm1, %v3228_v18 }
 0x1eb   :  { %2927 = vmatmul.mubr.msk.f32.gmra.mxu1 %vm279_vm0, %v4183_v61 }
 0x1ec   :  { %2929 = vmatprep.mubr.msk.f32.mxu1 %vm3229_vm1, %v3228_v18 }
 0x1ef   :  { %2930 = vmatmul.mubr.msk.f32.gmra.mxu1 %vm279_vm0, %v4192_v30 }
 0x1f0   :  { %2932 = vmatprep.mubr.msk.f32.mxu1 %vm3229_vm1, %v3228_v18 }
 0x1f3   :  { %2933 = vmatmul.mubr.msk.f32.gmra.mxu1 %vm279_vm0, %v4200_v13 }
 0x1f4   :  { %2955 = vmatprep.mubr.msk.f32.mxu1 %vm3229_vm1, %v3228_v18 }
 0x1f7   :  { %2956 = vmatmul.mubr.msk.f32.vlgmr.msra.gmra.mxu1 %vm279_vm0, %v3925_v27  ;;  %v2521_v27 = vld [vmem:[%s4673_s2 + $0x80] sm:$0xff] }
 0x1f8   :  { %2965 = vmatpush3.msra.mxu1 %v2524_v49  ;;  %2958 = vmatprep.mubr.msk.f32.mxu1 %vm3229_vm1, %v3228_v18 }
 0x1f9   :  { %2966 = vmatprep.subr.mxu1 %v3228_v18 }
 0x1fa   :  { %2967 = vmatpush3.msra.mxu1 %v2523_v14 }
 0x1fb   :  { %2959 = vmatmul.mubr.msk.f32.gmra.mxu1 %vm279_vm0, %v3929_v10  ;;  %2968 = vmatprep.subr.mxu1 %v3228_v18  ;;  %v1852_v10 = vld [vmem:[%s4675_s4] sm:$0xff] }
 0x1fc   :  { %2969 = vmatpush3.msra.mxu1 %v2522_v63  ;;  %2961 = vmatprep.mubr.msk.f32.mxu1 %vm3229_vm1, %v3228_v18 }
 0x1fd   :  { %2970 = vmatprep.subr.mxu1 %v3228_v18  ;;  %1861 = vperm.xlu0 %3200, %v1852_v10  }
 0x1fe   :  { %2971 = vmatpush3.msra.mxu1 %v2521_v27 }
 0x1ff   :  { %2962 = vmatmul.mubr.msk.f32.gmra.mxu1 %vm279_vm0, %v3935_v47  ;;  %3022 = vmatprep.subr.mxu1 %v3228_v18  ;;  %v2545_v47 = vld [vmem:[%s4673_s2 + $0xd0] sm:$0xff] }
 0x200   :  { %2972 = vmatprep.mubr.msk.f32.mxu1 %vm3229_vm1, %v3228_v18 }
 0x201   :  { %1866 = vperm.xlu0 %3200, %v1853_v23  }
 0x203   :  { %2973 = vmatmul.mubr.msk.f32.vlgmr.msra.gmra.mxu1 %vm279_vm0, %v3944_v3  ;;  %v2543_v3 = vld [vmem:[%s4673_s2 + $0xc0] sm:$0xff] }
 0x204   :  { %3023 = vmatpush3.msra.mxu1 %v2546_v20  ;;  %2975 = vmatprep.mubr.msk.f32.mxu1 %vm3229_vm1, %v3228_v18 }
 0x205   :  { %3024 = vmatprep.subr.mxu1 %v3228_v18  ;;  %1881 = vperm.xlu0 %3200, %v1856_v35  }
 0x206   :  { %3025 = vmatpush3.msra.mxu1 %v2545_v47 }
 0x207   :  { %2976 = vmatmul.mubr.msk.f32.gmra.mxu1 %vm279_vm0, %v3953_v9  ;;  %3026 = vmatprep.subr.mxu1 %v3228_v18  ;;  %v1855_v9 = vld [vmem:[%s4675_s4 + $0x18] sm:$0xff] }
 0x208   :  { %2978 = vmatprep.mubr.msk.f32.mxu1 %vm3229_vm1, %v3228_v18  ;;  %3027 = vmatpush3.msra.mxu1 %v2544_v8 }
 0x209   :  { %3028 = vmatprep.subr.mxu1 %v3228_v18  ;;  %1876 = vperm.xlu1 %3201, %v1855_v9  }
 0x20a   :  { %3029 = vmatpush3.msra.mxu1 %v2543_v3  ;;  %1891 = vperm.xlu0 %3200, %v1858_v36  }
 0x20b   :  { %2979 = vmatmul.mubr.msk.f32.gmra.mxu1 %vm279_vm0, %v3964_v48  ;;  %3080 = vmatprep.subr.mxu1 %v3228_v18  ;;  %v1857_v48 = vld [vmem:[%s4675_s4 + $0x28] sm:$0xff] }
 0x20c   :  { %2981 = vmatprep.mubr.msk.f32.mxu1 %vm3229_vm1, %v3228_v18 }
 0x20d   :  { %1886 = vperm.xlu1 %3201, %v1857_v48  }
 0x20f   :  { %2982 = vmatmul.mubr.msk.f32.gmra.mxu1 %vm279_vm0, %v3968_v39  ;;  %v2568_v39 = vld [vmem:[%s4673_s2 + $0x118] sm:$0xff] }
 0x210   :  { %2984 = vmatprep.mubr.msk.f32.mxu1 %vm3229_vm1, %v3228_v18 }
 0x213   :  { %2985 = vmatmul.mubr.msk.f32.gmra.mxu1 %vm279_vm0, %v3972_v32  ;;  %v2567_v32 = vld [vmem:[%s4673_s2 + $0x110] sm:$0xff] }
 0x214   :  { %2987 = vmatprep.mubr.msk.f32.mxu1 %vm3229_vm1, %v3228_v18 }
 0x217   :  { %2988 = vmatmul.mubr.msk.f32.gmra.mxu1 %vm279_vm0, %v3980_v17  ;;  %v2566_v17 = vld [vmem:[%s4673_s2 + $0x108] sm:$0xff] }
 0x218   :  { %2990 = vmatprep.mubr.msk.f32.mxu1 %vm3229_vm1, %v3228_v18 }
 0x21b   :  { %2991 = vmatmul.mubr.msk.f32.gmra.mxu1 %vm279_vm0, %v3984_v25  ;;  %v2565_v25 = vld [vmem:[%s4673_s2 + $0x100] sm:$0xff] }
 0x21c   :  { %3030 = vmatprep.mubr.msk.f32.mxu1 %vm3229_vm1, %v3228_v18 }
 0x21f   :  { %3031 = vmatmul.mubr.msk.f32.vlgmr.msra.gmra.mxu1 %vm279_vm0, %v4134_v28 }
 0x220   :  { %3081 = vmatpush3.msra.mxu1 %v2568_v39  ;;  %3033 = vmatprep.mubr.msk.f32.mxu1 %vm3229_vm1, %v3228_v18 }
 0x221   :  { %3082 = vmatprep.subr.mxu1 %v3228_v18 }
 0x222   :  { %3083 = vmatpush3.msra.mxu1 %v2567_v32 }
 0x223   :  { %3034 = vmatmul.mubr.msk.f32.gmra.mxu1 %vm279_vm0, %v4151_v22  ;;  %3084 = vmatprep.subr.mxu1 %v3228_v18 }
 0x224   :  { %3036 = vmatprep.mubr.msk.f32.mxu1 %vm3229_vm1, %v3228_v18  ;;  %3085 = vmatpush3.msra.mxu1 %v2566_v17 }
 0x225   :  { %3086 = vmatprep.subr.mxu1 %v3228_v18 }
 0x226   :  { %3087 = vmatpush3.msra.mxu1 %v2565_v25 }
 0x227   :  { %3037 = vmatmul.mubr.msk.f32.gmra.mxu1 %vm279_vm0, %v4167_v37  ;;  %3120 = vmatprep.subr.mxu1 %v3228_v18 }
 0x228   :  { %3039 = vmatprep.mubr.msk.f32.mxu1 %vm3229_vm1, %v3228_v18 }
 0x22b   :  { %3040 = vmatmul.mubr.msk.f32.gmra.mxu1 %vm279_vm0, %v4183_v61 }
 0x22c   :  { %3042 = vmatprep.mubr.msk.f32.mxu1 %vm3229_vm1, %v3228_v18 }
 0x22f   :  { %3043 = vmatmul.mubr.msk.f32.gmra.mxu1 %vm279_vm0, %v4192_v30 }
 0x230   :  { %3045 = vmatprep.mubr.msk.f32.mxu1 %vm3229_vm1, %v3228_v18 }
 0x233   :  { %3046 = vmatmul.mubr.msk.f32.gmra.mxu1 %vm279_vm0, %v4200_v13 }
 0x234   :  { %3048 = vmatprep.mubr.msk.f32.mxu1 %vm3229_vm1, %v3228_v18 }
 0x237   :  { %3049 = vmatmul.mubr.msk.f32.gmra.mxu1 %vm279_vm0, %v4117_v45 }
 0x238   :  { %3088 = vmatprep.mubr.msk.f32.mxu1 %vm3229_vm1, %v3228_v18 }
 0x23b   :  { %3089 = vmatmul.mubr.msk.f32.vlgmr.msra.gmra.mxu1 %vm279_vm0, %v3988_v57 }
 0x23c   :  { %3091 = vmatprep.mubr.msk.f32.mxu1 %vm3229_vm1, %v3228_v18 }
 0x23f   :  { %3092 = vmatmul.mubr.msk.f32.gmra.mxu1 %vm279_vm0, %v3994_v50 }
 0x240   :  { %3094 = vmatprep.mubr.msk.f32.mxu1 %vm3229_vm1, %v3228_v18 }
 0x243   :  { %3095 = vmatmul.mubr.msk.f32.gmra.mxu1 %vm279_vm0, %v4010_v38 }
 0x244   :  { %3097 = vmatprep.mubr.msk.f32.mxu1 %vm3229_vm1, %v3228_v18 }
 0x247   :  { %3098 = vmatmul.mubr.msk.f32.gmra.mxu1 %vm279_vm0, %v4016_v40 }
 0x248   :  { %3100 = vmatprep.mubr.msk.f32.mxu1 %vm3229_vm1, %v3228_v18 }
 0x24b   :  { %3101 = vmatmul.mubr.msk.f32.gmra.mxu1 %vm279_vm0, %v4020_v42 }
 0x24c   :  { %3103 = vmatprep.mubr.msk.f32.mxu1 %vm3229_vm1, %v3228_v18 }
 0x24f   :  { %3104 = vmatmul.mubr.msk.f32.gmra.mxu1 %vm279_vm0, %v4024_v51 }
 0x250   :  { %3106 = vmatprep.mubr.msk.f32.mxu1 %vm3229_vm1, %v3228_v18 }
 0x253   :  { %3107 = vmatmul.mubr.msk.f32.gmra.mxu1 %vm279_vm0, %v4031_v56 }
 0x254   :  { %3128 = vmatprep.mubr.msk.f32.mxu1 %vm3229_vm1, %v3228_v18 }
 0x260   :  { %v697_v57 = vpop.f32.mrf.mxu1  ;;  %v4371_v50 = vpop.f32.mrf.mxu0 }
 0x262   :  { %v2858_v38 = vpop.f32.mrf.mxu1  ;;  %v2945_v40 = vpop.f32.mrf.mxu0 }
 0x265   :  { %v702_v42 = vpop.f32.mrf.mxu1  ;;  %v4373_v60 = vpop.f32.mrf.mxu0 }
 0x267   :  { %v2861_v55 = vpop.f32.mrf.mxu1  ;;  %v2948_v62 = vpop.f32.mrf.mxu0 }
 0x26a   :  { %v707_v51 = vpop.f32.mrf.mxu1  ;;  %v4375_v0 = vpop.f32.mrf.mxu0 }
 0x26c   :  { %v2864_v7 = vpop.f32.mrf.mxu1  ;;  %v2951_v33 = vpop.f32.mrf.mxu0 }
 0x26f   :  { %v712_v4 = vpop.f32.mrf.mxu1  ;;  %v4377_v56 = vpop.f32.mrf.mxu0 }
 0x271   :  { %v2867_v54 = vpop.f32.mrf.mxu1  ;;  %v2954_v29 = vpop.f32.mrf.mxu0 }
 0x273   :  { %v717_v5 = vpop.f32.mrf.mxu1  ;;  %v4379_v6 = vpop.f32.mrf.mxu0 }
 0x275   :  { %v2870_v34 = vpop.f32.mrf.mxu1  ;;  %v3003_v1 = vpop.f32.mrf.mxu0 }
 0x277   :  { %v722_v53 = vpop.f32.mrf.mxu1  ;;  %v4381_v31 = vpop.f32.mrf.mxu0 }
 0x279   :  { %v2873_v2 = vpop.f32.mrf.mxu1  ;;  %v3006_v45 = vpop.f32.mrf.mxu0 }
 0x27b   :  { %v727_v43 = vpop.f32.mrf.mxu1  ;;  %v4383_v59 = vpop.f32.mrf.mxu0 }
 0x27d   :  { %v2876_v11 = vpop.f32.mrf.mxu1  ;;  %v3009_v28 = vpop.f32.mrf.mxu0 }
 0x27f   :  { %v818_v21 = vpop.f32.mrf.mxu1  ;;  %v4385_v12 = vpop.f32.mrf.mxu0 }
 0x280   :  { %v819_v16 = vadd.f32 %v818_v21, %v697_v57 }
 0x281   :  { %v2887_v22 = vpop.f32.mrf.mxu1  ;;  %v3012_v44 = vpop.f32.mrf.mxu0 }
 0x283   :  { %v823_v15 = vpop.f32.mrf.mxu1  ;;  %v4387_v37 = vpop.f32.mrf.mxu0 }
 0x284   :  { %v824_v26 = vadd.f32 %v823_v15, %v702_v42 }
 0x285   :  { %v2890_v52 = vpop.f32.mrf.mxu1  ;;  %v3015_v61 = vpop.f32.mrf.mxu0 }
 0x287   :  { %v828_v19 = vpop.f32.mrf.mxu1  ;;  %v4389_v30 = vpop.f32.mrf.mxu0 }
 0x288   :  { %v829_v13 = vadd.f32 %v828_v19, %v707_v51 }
 0x289   :  { %v2893_v49 = vpop.f32.mrf.mxu1  ;;  %v3018_v14 = vpop.f32.mrf.mxu0 }
 0x28b   :  { %v833_v63 = vpop.f32.mrf.mxu1  ;;  %v4391_v27 = vpop.f32.mrf.mxu0 }
 0x28c   :  { %v834_v58 = vadd.f32 %v833_v63, %v712_v4 }
 0x28d   :  { %v2896_v10 = vpop.f32.mrf.mxu1  ;;  %v3021_v20 = vpop.f32.mrf.mxu0 }
 0x28f   :  { %v838_v47 = vpop.f32.mrf.mxu1  ;;  %v4393_v23 = vpop.f32.mrf.mxu0 }
 0x290   :  { %v839_v8 = vadd.f32 %v838_v47, %v717_v5 }
 0x291   :  { %v2899_v3 = vpop.f32.mrf.mxu1  ;;  %v3061_v24 = vpop.f32.mrf.mxu0 }
 0x293   :  { %v843_v35 = vpop.f32.mrf.mxu1  ;;  %v4395_v9 = vpop.f32.mrf.mxu0 }
 0x294   :  { %v844_v36 = vadd.f32 %v843_v35, %v722_v53 }
 0x295   :  { %v2902_v48 = vpop.f32.mrf.mxu1  ;;  %v3064_v39 = vpop.f32.mrf.mxu0 }
 0x297   :  { %v848_v32 = vpop.f32.mrf.mxu1  ;;  %v4397_v17 = vpop.f32.mrf.mxu0 }
 0x298   :  { %v849_v25 = vadd.f32 %v848_v32, %v727_v43 }
 0x299   :  { %v2905_v57 = vpop.f32.mrf.mxu1  ;;  %v3067_v38 = vpop.f32.mrf.mxu0 }
 0x29b   :  { %v959_v40 = vpop.f32.mrf.mxu1  ;;  %v4399_v42 = vpop.f32.mrf.mxu0 }
 0x29c   :  { %v993_v55 = vadd.f32 %v959_v40, %v819_v16 }
 0x29d   :  { %v2916_v62 = vpop.f32.mrf.mxu1  ;;  %v3070_v51 = vpop.f32.mrf.mxu0 }
 0x29e   :  { %v1141_v7 = vadd.f32 %v4371_v50, %v993_v55 }
 0x29f   :  { %v964_v33 = vpop.f32.mrf.mxu1  ;;  %v4402_v4 = vpop.f32.mrf.mxu0 }
 0x2a0   :  { %v994_v54 = vadd.f32 %v964_v33, %v824_v26 }
 0x2a1   :  { %v2919_v29 = vpop.f32.mrf.mxu1  ;;  %v3073_v5 = vpop.f32.mrf.mxu0 }
 0x2a2   :  { %v4405_v34 = vadd.f32 %v4373_v60, %v994_v54 }
 0x2a3   :  { %v969_v1 = vpop.f32.mrf.mxu1  ;;  %v4407_v53 = vpop.f32.mrf.mxu0 }
 0x2a4   :  { %v995_v2 = vadd.f32 %v969_v1, %v829_v13 }
 0x2a5   :  { %v2922_v45 = vpop.f32.mrf.mxu1  ;;  %v3076_v43 = vpop.f32.mrf.mxu0 }
 0x2a6   :  { %v4410_v11 = vadd.f32 %v4375_v0, %v995_v2 }
 0x2a7   :  { %v974_v28 = vpop.f32.mrf.mxu1  ;;  %v4412_v50 = vpop.f32.mrf.mxu0 }
 0x2a8   :  { %v996_v21 = vadd.f32 %v974_v28, %v834_v58 }
 0x2a9   :  { %v2925_v16 = vpop.f32.mrf.mxu1  ;;  %v3079_v22 = vpop.f32.mrf.mxu0 }
 0x2aa   :  { %v4415_v44 = vadd.f32 %v4377_v56, %v996_v21 }
 0x2ab   :  { %v979_v60 = vpop.f32.mrf.mxu1 }
 0x2ac   :  { %v997_v15 = vadd.f32 %v979_v60, %v839_v8 }
 0x2ad   :  { %v2928_v26 = vpop.f32.mrf.mxu1 }
 0x2ae   :  { %v2052_v26 = vld [vmem:[%s4676_s5 + $0x18] sm:$0xff] }
 0x2af   :  { %v984_v52 = vpop.f32.mrf.mxu1  ;;  %3121 = vmatpush3.msra.mxu1 %v2052_v26 }
 0x2b0   :  { %v998_v61 = vadd.f32 %v984_v52, %v844_v36  ;;  %v2578_v52 = vld [vmem:[%s4676_s5 + $0x30] sm:$0xff]  ;;  %3122 = vmatprep.subr.mxu1 %v3228_v18 }
 0x2b1   :  { %v2931_v19 = vpop.f32.mrf.mxu1 }
 0x2b3   :  { %v989_v13 = vpop.f32.mrf.mxu1 }
 0x2b4   :  { %v999_v49 = vadd.f32 %v989_v13, %v849_v25  ;;  %v2577_v13 = vld [vmem:[%s4676_s5 + $0x28] sm:$0xff] }
 0x2b5   :  { %v2934_v14 = vpop.f32.mrf.mxu1 }
 0x2b7   :  { %v1127_v0 = vpop.f32.mrf.mxu1 }
 0x2b8   :  { %v4417_v63 = vadd.f32 %v1127_v0, %v997_v15  ;;  %v2579_v15 = vld [vmem:[%s4676_s5 + $0x38] sm:$0xff] }
 0x2b9   :  { %v2957_v10 = vpop.f32.mrf.mxu1  ;;  %3110 = vmatpush3.msra.mxu0 %v2579_v15 }
 0x2ba   :  { %3111 = vmatprep.subr.mxu0 %v3228_v18  ;;  %v2576_v10 = vld [vmem:[%s4676_s5 + $0x20] sm:$0xff] }
 0x2bb   :  { %v1132_v20 = vpop.f32.mrf.mxu1  ;;  %3112 = vmatpush3.msra.mxu0 %v2578_v52 }
 0x2bc   :  { %v4419_v58 = vadd.f32 %v1132_v20, %v998_v61  ;;  %v2051_v61 = vld [vmem:[%s4676_s5 + $0x10] sm:$0xff]  ;;  %3113 = vmatprep.subr.mxu0 %v3228_v18  ;;  %v2049_v20 = vld [vmem:[%s4676_s5] sm:$0xff] }
 0x2bd   :  { %v2960_v47 = vpop.f32.mrf.mxu1  ;;  %3123 = vmatpush3.msra.mxu1 %v2051_v61  ;;  %3114 = vmatpush3.msra.mxu0 %v2577_v13 }
 0x2be   :  { %3124 = vmatprep.subr.mxu1 %v3228_v18  ;;  %3115 = vmatprep.subr.mxu0 %v3228_v18 }
 0x2bf   :  { %v1137_v3 = vpop.f32.mrf.mxu1  ;;  %3116 = vmatpush3.msra.mxu0 %v2576_v10 }
 0x2c0   :  { %v4421_v56 = vadd.f32 %v1137_v3, %v999_v49  ;;  %v2050_v49 = vld [vmem:[%s4676_s5 + $0x8] sm:$0xff]  ;;  %3131 = vmatprep.subr.mxu0 %v3228_v18 }
 0x2c1   :  { %v2963_v24 = vpop.f32.mrf.mxu1  ;;  %3125 = vmatpush3.msra.mxu1 %v2050_v49 }
 0x2c2   :  { %3126 = vmatprep.subr.mxu1 %v3228_v18 }
 0x2c3   :  { %v1255_v8 = vpop.f32.mrf.mxu1  ;;  %3127 = vmatpush3.msra.mxu1 %v2049_v20 }
 0x2c4   :  { %v1289_v35 = vadd.f32 %v1255_v8, %v1141_v7  ;;  %3142 = vmatprep.subr.mxu1 %v3228_v18 }
 0x2c5   :  { %v2974_v48 = vpop.f32.mrf.mxu1 }
 0x2c7   :  { %v1260_v36 = vpop.f32.mrf.mxu1 }
 0x2c8   :  { %v1290_v14 = vadd.f32 %v1260_v36, %v4405_v34 }
 0x2c9   :  { %v2977_v39 = vpop.f32.mrf.mxu1 }
 0x2ca   :  { %v1438_v24 = vadd.f32 %v4381_v31, %v1290_v14  ;;  %v4469_v31 = vpop.permute.xlu0 %1861 }
 0x2cb   :  { %v1265_v32 = vpop.f32.mrf.mxu1 }
 0x2cc   :  { %v1291_v47 = vadd.f32 %v1265_v32, %v4410_v11  ;;  %v1437_v11 = vadd.f32 %v4379_v6, %v1289_v35 }
 0x2cd   :  { %v2980_v25 = vpop.f32.mrf.mxu1 }
 0x2ce   :  { %v1439_v36 = vadd.f32 %v4383_v59, %v1291_v47 }
 0x2cf   :  { %v1270_v57 = vpop.f32.mrf.mxu1 }
 0x2d0   :  { %v1292_v3 = vadd.f32 %v1270_v57, %v4415_v44 }
 0x2d1   :  { %v2983_v38 = vpop.f32.mrf.mxu1 }
 0x2d2   :  { %v1440_v44 = vadd.f32 %v4385_v12, %v1292_v3 }
 0x2d3   :  { %v1275_v40 = vpop.f32.mrf.mxu1 }
 0x2d4   :  { %v1293_v32 = vadd.f32 %v1275_v40, %v4417_v63  ;;  %v4478_v40 = vpop.permute.xlu1 %1871 }
 0x2d5   :  { %v2986_v55 = vpop.f32.mrf.mxu1 }
 0x2d6   :  { %v1441_v6 = vadd.f32 %v4387_v37, %v1293_v32 }
 0x2d7   :  { %v1280_v62 = vpop.f32.mrf.mxu1 }
 0x2d9   :  { %v2989_v51 = vpop.f32.mrf.mxu1 }
 0x2db   :  { %v4423_v33 = vpop.f32.mrf.mxu1 }
 0x2dd   :  { %v2992_v54 = vpop.f32.mrf.mxu1 }
 0x2de   :  { %v1294_v54 = vadd.f32 %v1280_v62, %v4419_v58  ;;  %v1867_v62 = vpop.permute.xlu0 %1866 }
 0x2df   :  { %v1515_v29 = vpop.f32.mrf.mxu1 }
 0x2e0   :  { %v1549_v25 = vadd.f32 %v1515_v29, %v1437_v11  ;;  %v1442_v58 = vadd.f32 %v4389_v30, %v1294_v54 }
 0x2e1   :  { %v3032_v5 = vpop.f32.mrf.mxu1 }
 0x2e2   :  { %v1697_v59 = vadd.f32 %v4393_v23, %v1549_v25  ;;  %v1295_v23 = vadd.f32 %v4423_v33, %v4421_v56 }
 0x2e3   :  { %v1520_v1 = vpop.f32.mrf.mxu1 }
 0x2e4   :  { %v1550_v48 = vadd.f32 %v1520_v1, %v1438_v24 }
 0x2e5   :  { %v3035_v2 = vpop.f32.mrf.mxu1 }
 0x2e6   :  { %v1698_v51 = vadd.f32 %v4395_v9, %v1550_v48 }
 0x2e7   :  { %v1525_v45 = vpop.f32.mrf.mxu1 }
 0x2e8   :  { %v1551_v38 = vadd.f32 %v1525_v45, %v1439_v36 }
 0x2e9   :  { %v3038_v7 = vpop.f32.mrf.mxu1 }
 0x2ea   :  { %v1699_v63 = vadd.f32 %v4397_v17, %v1551_v38 }
 0x2eb   :  { %v1530_v43 = vpop.f32.mrf.mxu1 }
 0x2ec   :  { %v1552_v55 = vadd.f32 %v1530_v43, %v1440_v44 }
 0x2ed   :  { %v3041_v28 = vpop.f32.mrf.mxu1 }
 0x2ee   :  { %v1700_v9 = vadd.f32 %v4399_v42, %v1552_v55 }
 0x2ef   :  { %v1535_v21 = vpop.f32.mrf.mxu1 }
 0x2f0   :  { %v1553_v29 = vadd.f32 %v1535_v21, %v1441_v6  ;;  %v1877_v21 = vpop.permute.xlu1 %1876 }
 0x2f1   :  { %v3044_v16 = vpop.f32.mrf.mxu1 }
 0x2f2   :  { %v1701_v30 = vadd.f32 %v4402_v4, %v1553_v29 }
 0x2f3   :  { %v4425_v22 = vpop.f32.mrf.mxu1 }
 0x2f4   :  { %v1554_v7 = vadd.f32 %v4425_v22, %v1442_v58  ;;  %v1882_v22 = vpop.permute.xlu0 %1881  ;;  %v1887_v47 = vpop.permute.xlu1 %1886 }
 0x2f5   :  { %v3047_v60 = vpop.f32.mrf.mxu1 }
 0x2f6   :  { %v1443_v60 = vadd.f32 %v4391_v27, %v1295_v23  ;;  %v1702_v52 = vadd.f32 %v4407_v53, %v1554_v7 }
 0x2f7   :  { %v4439_v19 = vpop.f32.mrf.mxu1 }
 0x2f8   :  { %v1555_v61 = vadd.f32 %v4439_v19, %v1443_v60  ;;  %v1892_v36 = vpop.permute.xlu0 %1891 }
 0x2f9   :  { %v3050_v0 = vpop.f32.mrf.mxu1 }
 0x2fa   :  { %v1703_v19 = vadd.f32 %v4412_v50, %v1555_v61 }
 0x2fb   :  { %v1811_v34 = vpop.f32.mrf.mxu1 }
 0x2fc   :  { %v4480_v1 = vadd.f32 %v1811_v34, %v1697_v59 }
 0x2fd   :  { %v3090_v8 = vpop.f32.mrf.mxu1 }
 0x2fe   :  { %v1894_v28 = vmul.f32 %v4469_v31, %v4480_v1 }
 0x2ff   :  { %v1816_v39 = vpop.f32.mrf.mxu1 }
 0x300   :  { %v4475_v35 = vadd.f32 %v1816_v39, %v1698_v51  ;;  %v1901_v13 = vsel %vm279_vm0, %v1894_v28, 0.0 }
 0x301   :  { %v3093_v57 = vpop.f32.mrf.mxu1 }
 0x302   :  { %v1895_v45 = vmul.f32 %v1867_v62, %v4475_v35 }
 0x303   :  { %v1821_v5 = vpop.f32.mrf.mxu1 }
 0x304   :  { %v4482_v2 = vadd.f32 %v1821_v5, %v1699_v63  ;;  %v1902_v56 = vsel %vm279_vm0, %v1895_v45, 0.0 }
 0x305   :  { %v3096_v12 = vpop.f32.mrf.mxu1  ;;  %v1903_v14 = vadd.f32 %v1902_v56, %v1901_v13 }
 0x306   :  { %v1896_v42 = vmul.f32 %v4478_v40, %v4482_v2 }
 0x307   :  { %v1826_v37 = vpop.f32.mrf.mxu1 }
 0x308   :  { %v4489_v17 = vadd.f32 %v1826_v37, %v1700_v9  ;;  %v1904_v4 = vsel %vm279_vm0, %v1896_v42, 0.0 }
 0x309   :  { %v3099_v43 = vpop.f32.mrf.mxu1  ;;  %v1905_v20 = vadd.f32 %v1904_v4, %v1903_v14 }
 0x30a   :  { %v1897_v33 = vmul.f32 %v1877_v21, %v4489_v17 }
 0x30b   :  { %v1831_v16 = vpop.f32.mrf.mxu1 }
 0x30c   :  { %v4500_v15 = vadd.f32 %v1831_v16, %v1701_v30  ;;  %v1906_v0 = vsel %vm279_vm0, %v1897_v33, 0.0 }
 0x30d   :  { %v3102_v26 = vpop.f32.mrf.mxu1  ;;  %v1907_v24 = vadd.f32 %v1906_v0, %v1905_v20 }
 0x30e   :  { %v1898_v49 = vmul.f32 %v1882_v22, %v4500_v15 }
 0x30f   :  { %v1836_v27 = vpop.f32.mrf.mxu1 }
 0x310   :  { %v4508_v10 = vadd.f32 %v1836_v27, %v1702_v52  ;;  %v1908_v3 = vsel %vm279_vm0, %v1898_v49, 0.0 }
 0x311   :  { %v3105_v34 = vpop.f32.mrf.mxu1  ;;  %v1909_v39 = vadd.f32 %v1908_v3, %v1907_v24 }
 0x312   :  { %v1899_v53 = vmul.f32 %v1887_v47, %v4508_v10 }
 0x313   :  { %v1841_v8 = vpop.f32.mrf.mxu1 }
 0x314   :  { %v1910_v11 = vsel %vm279_vm0, %v1899_v53, 0.0  ;;  %v1851_v48 = vadd.f32 %v1841_v8, %v1703_v19 }
 0x315   :  { %v3108_v32 = vpop.f32.mrf.mxu1  ;;  %v1911_v38 = vadd.f32 %v1910_v11, %v1909_v39 }
 0x316   :  { %v1900_v25 = vmul.f32 %v1892_v36, %v1851_v48  ;;  %v1962_v32 = vld [vmem:[%s4674_s3 + $0x2] sm:$0x1] }
 0x318   :  { %v1912_v44 = vsel %vm279_vm0, %v1900_v25, 0.0 }
 0x319   :  { %v1913_v57 = vadd.f32 %v1912_v44, %v1911_v38  ;;  %v1967_v44 = vld [vmem:[%s4674_s3 + $0x3] sm:$0x1] }
 0x31b   :  { %v1914_v55 = vrot.slane %v1913_v57, 4 }
 0x31d   :  { %v1915_v51 = vadd.f32 %v1914_v55, %v1913_v57 }
 0x31f   :  { %v1916_v54 = vrot.slane %v1915_v51, 2 }
 0x321   :  { %v1917_v5 = vadd.f32 %v1916_v54, %v1915_v51 }
 0x323   :  { %v1918_v6 = vrot.slane %v1917_v5, 1 }
 0x325   :  { %v1919_v59 = vadd.f32 %v1918_v6, %v1917_v5 }
 0x327   :  { %v1920_v50 = vmul.f32 0.055555556, %v1919_v59 }
 0x329   :  { %v1921_v63 = vsub.f32 %v4480_v1, %v1920_v50  ;;  %v1922_v12 = vsub.f32 %v4475_v35, %v1920_v50  ;;  %v1923_v29 = vsub.f32 %v4482_v2, %v1920_v50  ;;  %v1924_v9 = vsub.f32 %v4489_v17, %v1920_v50 }
 0x32a   :  { %v1925_v58 = vsub.f32 %v4500_v15, %v1920_v50  ;;  %v1926_v37 = vsub.f32 %v4508_v10, %v1920_v50  ;;  %v1927_v28 = vsub.f32 %v1851_v48, %v1920_v50 }
 0x32b   :  { %v1928_v23 = vmul.f32 %v1921_v63, %v4469_v31  ;;  %v1929_v45 = vmul.f32 %v1922_v12, %v1867_v62  ;;  %v1930_v7 = vmul.f32 %v1923_v29, %v4478_v40  ;;  %v1931_v43 = vmul.f32 %v1924_v9, %v1877_v21 }
 0x32c   :  { %v1932_v42 = vmul.f32 %v1925_v58, %v1882_v22  ;;  %v1933_v56 = vmul.f32 %v1926_v37, %v1887_v47  ;;  %v1934_v13 = vmul.f32 %v1927_v28, %v1892_v36 }
 0x32d   :  { %v1935_v30 = vmul.f32 %v1928_v23, %v1928_v23  ;;  %v1936_v16 = vmul.f32 %v1929_v45, %v1929_v45  ;;  %v1937_v60 = vmul.f32 %v1930_v7, %v1930_v7  ;;  %v1938_v33 = vmul.f32 %v1931_v43, %v1931_v43 }
 0x32e   :  { %v1939_v4 = vmul.f32 %v1932_v42, %v1932_v42  ;;  %v1940_v49 = vmul.f32 %v1933_v56, %v1933_v56  ;;  %v1941_v22 = vmul.f32 %v1934_v13, %v1934_v13 }
 0x32f   :  { %v1942_v26 = vsel %vm279_vm0, %v1935_v30, 0.0  ;;  %v1943_v52 = vsel %vm279_vm0, %v1936_v16, 0.0  ;;  %v1945_v31 = vsel %vm279_vm0, %v1937_v60, 0.0  ;;  %v1947_v40 = vsel %vm279_vm0, %v1938_v33, 0.0 }
 0x330   :  { %v1944_v61 = vadd.f32 %v1943_v52, %v1942_v26  ;;  %v1949_v14 = vsel %vm279_vm0, %v1939_v4, 0.0  ;;  %v1951_v0 = vsel %vm279_vm0, %v1940_v49, 0.0  ;;  %v1953_v47 = vsel %vm279_vm0, %v1941_v22, 0.0 }
 0x332   :  { %v1946_v62 = vadd.f32 %v1945_v31, %v1944_v61 }
 0x334   :  { %v1948_v21 = vadd.f32 %v1947_v40, %v1946_v62 }
 0x336   :  { %v1950_v27 = vadd.f32 %v1949_v14, %v1948_v21 }
 0x338   :  { %v1952_v20 = vadd.f32 %v1951_v0, %v1950_v27  ;;  %v2585_v27 = vld [vmem:[%s4676_s5 + $0x58] sm:$0xff] }
 0x339   :  { %v2590_v0 = vld [vmem:[%s4676_s5 + $0x78] sm:$0xff] }
 0x33a   :  { %v1954_v34 = vadd.f32 %v1953_v47, %v1952_v20 }
 0x33c   :  { %v1955_v3 = vrot.slane %v1954_v34, 4 }
 0x33e   :  { %v1956_v53 = vadd.f32 %v1955_v3, %v1954_v34  ;;  %v2589_v34 = vld [vmem:[%s4676_s5 + $0x70] sm:$0xff]  ;;  %v2583_v3 = vld [vmem:[%s4676_s5 + $0x48] sm:$0xff] }
 0x340   :  { %v1957_v19 = vrot.slane %v1956_v53, 2 }
 0x342   :  { %v1958_v24 = vadd.f32 %v1957_v19, %v1956_v53  ;;  %v2588_v53 = vld [vmem:[%s4676_s5 + $0x68] sm:$0xff]  ;;  %v2582_v19 = vld [vmem:[%s4676_s5 + $0x40] sm:$0xff] }
 0x344   :  { %v1959_v8 = vrot.slane %v1958_v24, 1 }
 0x346   :  { %v1960_v11 = vadd.f32 %v1959_v8, %v1958_v24  ;;  %v2587_v24 = vld [vmem:[%s4676_s5 + $0x60] sm:$0xff]  ;;  %v2390_v8 = vld [vmem:[%s4677_s6 + $0x78] sm:$0xff] }
 0x348   :  { %v1961_v48 = vmul.f32 0.055555556, %v1960_v11 }
 0x34a   :  { %v1963_v36 = vmax.f32 %v1961_v48, 0.0 }
 0x34c   :  { %v1964_v39 = vadd.f32 1e-05, %v1963_v36  ;;  %v2389_v36 = vld [vmem:[%s4677_s6 + $0x70] sm:$0xff] }
 0x34e   :  { %3204 = vrsqrt.f32 %v1964_v39  ;;  %v2388_v39 = vld [vmem:[%s4677_s6 + $0x68] sm:$0xff] }
 0x35b   :  { %v3205_v25 = vpop.eup %3204 }
 0x35c   :  { %v1966_v38 = vmul.f32 %v3205_v25, %v1962_v32  ;;  %v2387_v32 = vld [vmem:[%s4677_s6 + $0x60] sm:$0xff]  ;;  %v2386_v25 = vld [vmem:[%s4677_s6 + $0x58] sm:$0xff] }
 0x35e   :  { %v1968_v57 = vmul.f32 %v1966_v38, %v1920_v50  ;;  %v1973_v55 = vrot.slane %v1966_v38, %v3665_v46  ;;  %v2385_v38 = vld [vmem:[%s4677_s6 + $0x50] sm:$0xff] }
 0x360   :  { %v1969_v51 = vsub.f32 %v1967_v44, %v1968_v57  ;;  %v1974_v54 = vmul.f32 %v1973_v55, %v4480_v1  ;;  %v1975_v5 = vmul.f32 %v1973_v55, %v4475_v35  ;;  %v1976_v6 = vmul.f32 %v1973_v55, %v4482_v2  ;;  %v2384_v44 = vld [vmem:[%s4677_s6 + $0x48] sm:$0xff]  ;;  %v2383_v57 = vld [vmem:[%s4677_s6 + $0x40] sm:$0xff] }
 0x361   :  { %v1977_v59 = vmul.f32 %v1973_v55, %v4489_v17  ;;  %v1978_v12 = vmul.f32 %v1973_v55, %v4500_v15  ;;  %v1979_v29 = vmul.f32 %v1973_v55, %v4508_v10  ;;  %v2382_v55 = vld [vmem:[%s4677_s6 + $0x38] sm:$0xff] }
 0x362   :  { %v1984_v63 = vrot.slane %v1969_v51, %v3665_v46  ;;  %v2381_v51 = vld [vmem:[%s4677_s6 + $0x30] sm:$0xff] }
 0x364   :  { %v1985_v9 = vadd.f32 %v1984_v63, %v1974_v54  ;;  %v1986_v58 = vadd.f32 %v1984_v63, %v1975_v5  ;;  %v1987_v50 = vadd.f32 %v1984_v63, %v1976_v6  ;;  %v1988_v37 = vadd.f32 %v1984_v63, %v1977_v59  ;;  %v2380_v54 = vld [vmem:[%s4677_s6 + $0x28] sm:$0xff]  ;;  %v2379_v5 = vld [vmem:[%s4677_s6 + $0x20] sm:$0xff]  ;;  %v2378_v6 = vld [vmem:[%s4677_s6 + $0x18] sm:$0xff] }
 0x365   :  { %v1989_v23 = vadd.f32 %v1984_v63, %v1978_v12  ;;  %v1990_v45 = vadd.f32 %v1984_v63, %v1979_v29  ;;  %v2377_v59 = vld [vmem:[%s4677_s6 + $0x10] sm:$0xff]  ;;  %v2376_v63 = vld [vmem:[%s4677_s6 + $0x8] sm:$0xff]  ;;  %v2375_v12 = vld [vmem:[%s4677_s6] sm:$0xff] }
 0x366   :  { %v1992_v7 = vmax.f32 %v1985_v9, 0.0  ;;  %v1993_v1 = vmax.f32 %v1986_v58, 0.0  ;;  %v1994_v43 = vmax.f32 %v1987_v50, 0.0  ;;  %v1995_v35 = vmax.f32 %v1988_v37, 0.0 }
 0x367   :  { %v1996_v28 = vmax.f32 %v1989_v23, 0.0  ;;  %v1997_v2 = vmax.f32 %v1990_v45, 0.0 }
 0x368   :  { %v1999_v42 = vrot.slane %v1992_v7, 1  ;;  %v2000_v17 = vrot.slane %v1993_v1, 1  ;;  %v2001_v30 = vrot.slane %v1994_v43, 1  ;;  %v2002_v46 = vrot.slane %v1995_v35, 1 }
 0x369   :  { %v2003_v16 = vrot.slane %v1996_v28, 1  ;;  %v2004_v15 = vrot.slane %v1997_v2, 1 }
 0x36a   :  { %v2010_v10 = vsel %vm597_vm2, %v2000_v17, %v2001_v30  ;;  %v2011_v60 = vsel %vm597_vm2, %v1999_v42, %v2000_v17 }
 0x36b   :  { %v2007_v56 = vsel %vm597_vm2, %v2003_v16, %v2004_v15  ;;  %v2008_v33 = vsel %vm597_vm2, %v2002_v46, %v2003_v16  ;;  %v2013_v26 = vmax.f32 %v1992_v7, %v2011_v60  ;;  %v2014_v52 = vmax.f32 %v1993_v1, %v2010_v10  ;;  %v2592_v1 = vld [vmem:[%s4678_s7] ss:$0 sm:$0xff] }
 0x36c   :  { %v2016_v61 = vmax.f32 %v1995_v35, %v2008_v33  ;;  %v2017_v13 = vmax.f32 %v1996_v28, %v2007_v56 }
 0x36d   :  { %v2020_v4 = vrot.slane %v2013_v26, 5  ;;  %v2021_v31 = vrot.slane %v2014_v52, 5 }
 0x36e   :  { %v2023_v62 = vrot.slane %v2016_v61, 5  ;;  %v2024_v49 = vrot.slane %v2017_v13, 5 }
 0x36f   :  { %v2032_v40 = vsel %vm1007_vm3, %v2020_v4, %v2021_v31 }
 0x370   :  { %v2029_v21 = vsel %vm1007_vm3, %v2023_v62, %v2024_v49  ;;  %v2034_v22 = vmax.f32 %v2013_v26, %v2032_v40 }
 0x371   :  { %v2037_v14 = vmax.f32 %v2016_v61, %v2029_v21 }
 0x372   :  { %2041 = vst.msk [vmem:[#allocation2] sm:$0xff] %vm279_vm0, %v2034_v22 }
 0x373   :  { %2044 = vst.msk [vmem:[#allocation2 + $0x18] sm:$0xff] %vm279_vm0, %v2037_v14 }
 0x37a   :  { %v2054_v20 = vld [vmem:[#allocation2 + $0x1] ss:$25 sm:$0x3]  ;;  %v2048_v47 = vld [vmem:[#allocation2] ss:$25 sm:$0x3] }
 0x37b   :  { %3118 = vmatmul.mubr.msk.f32.vlgmr.msra.gmra.mxu0 %vm279_vm0, %v2054_v20  ;;  %3129 = vmatmul.mubr.msk.f32.vlgmr.msra.gmra.mxu1 %vm279_vm0, %v2048_v47  ;;  %v2207_v11 = vld [vmem:[#allocation2 + $0x5] ss:$25 sm:$0x3]  ;;  %v2288_v48 = vld [vmem:[#allocation2 + $0x6] ss:$25 sm:$0x3] }
 0x37c   :  { %3132 = vmatpush3.msra.mxu0 %v2585_v27  ;;  %3143 = vmatpush3.msra.mxu1 %v2590_v0 }
 0x37d   :  { %3133 = vmatprep.subr.mxu0 %v3228_v18  ;;  %3144 = vmatprep.subr.mxu1 %v3228_v18 }
 0x37e   :  { %3134 = vmatpush3.msra.mxu0 %v2584_v41  ;;  %3145 = vmatpush3.msra.mxu1 %v2589_v34 }
 0x37f   :  { %3135 = vmatprep.subr.mxu0 %v3228_v18  ;;  %3146 = vmatprep.subr.mxu1 %v3228_v18 }
 0x380   :  { %3136 = vmatpush3.msra.mxu0 %v2583_v3  ;;  %3147 = vmatpush3.msra.mxu1 %v2588_v53 }
 0x381   :  { %3137 = vmatprep.subr.mxu0 %v3228_v18  ;;  %3148 = vmatprep.subr.mxu1 %v3228_v18 }
 0x382   :  { %3138 = vmatpush3.msra.mxu0 %v2582_v19  ;;  %3139 = vmatprep.mubr.msk.f32.mxu0 %vm3229_vm1, %v3228_v18 }
 0x383   :  { %3149 = vmatpush3.msra.mxu1 %v2587_v24  ;;  %3150 = vmatprep.mubr.msk.f32.mxu1 %vm3229_vm1, %v3228_v18 }
 0x384   :  { %3140 = vmatmul.mubr.msk.f32.vlgmr.msra.gmra.mxu0 %vm279_vm0, %v2207_v11  ;;  %3151 = vmatmul.mubr.msk.f32.vlgmr.msra.gmra.mxu1 %vm279_vm0, %v2288_v48 }
 0x385   :  { %3153 = vmatprep.subr.mxu0 %v3228_v18  ;;  %3185 = vmatprep.mubr.msk.f32.mxu0 %vm3229_vm1, %v3228_v18 }
 0x386   :  { %3154 = vmatpush3.msra.mxu0 %v2390_v8 }
 0x387   :  { %3155 = vmatprep.subr.mxu0 %v3228_v18 }
 0x388   :  { %3156 = vmatpush3.msra.mxu0 %v2389_v36 }
 0x389   :  { %3157 = vmatprep.subr.mxu0 %v3228_v18 }
 0x38a   :  { %3158 = vmatpush3.msra.mxu0 %v2388_v39 }
 0x38b   :  { %3159 = vmatprep.subr.mxu0 %v3228_v18 }
 0x38c   :  { %3160 = vmatpush3.msra.mxu0 %v2387_v32 }
 0x38d   :  { %3161 = vmatprep.subr.mxu0 %v3228_v18 }
 0x38e   :  { %3162 = vmatpush3.msra.mxu0 %v2386_v25 }
 0x38f   :  { %3163 = vmatprep.subr.mxu0 %v3228_v18 }
 0x390   :  { %3164 = vmatpush3.msra.mxu0 %v2385_v38 }
 0x391   :  { %3165 = vmatprep.subr.mxu0 %v3228_v18 }
 0x392   :  { %3166 = vmatpush3.msra.mxu0 %v2384_v44 }
 0x393   :  { %3167 = vmatprep.subr.mxu0 %v3228_v18 }
 0x394   :  { %3168 = vmatpush3.msra.mxu0 %v2383_v57 }
 0x395   :  { %3169 = vmatprep.subr.mxu0 %v3228_v18 }
 0x396   :  { %3170 = vmatpush3.msra.mxu0 %v2382_v55 }
 0x397   :  { %3171 = vmatprep.subr.mxu0 %v3228_v18 }
 0x398   :  { %3172 = vmatpush3.msra.mxu0 %v2381_v51 }
 0x399   :  { %3173 = vmatprep.subr.mxu0 %v3228_v18 }
 0x39a   :  { %3174 = vmatpush3.msra.mxu0 %v2380_v54 }
 0x39b   :  { %3175 = vmatprep.subr.mxu0 %v3228_v18 }
 0x39c   :  { %3176 = vmatpush3.msra.mxu0 %v2379_v5 }
 0x39d   :  { %3177 = vmatprep.subr.mxu0 %v3228_v18 }
 0x39e   :  { %3178 = vmatpush3.msra.mxu0 %v2378_v6 }
 0x39f   :  { %3179 = vmatprep.subr.mxu0 %v3228_v18 }
 0x3a0   :  { %3180 = vmatpush3.msra.mxu0 %v2377_v59 }
 0x3a1   :  { %3181 = vmatprep.subr.mxu0 %v3228_v18 }
 0x3a2   :  { %3182 = vmatpush3.msra.mxu0 %v2376_v63 }
 0x3a3   :  { %3183 = vmatprep.subr.mxu0 %v3228_v18  ;;  %v2593_v18 = vld [vmem:[%s4678_s7 + $0x1] ss:$0 sm:$0xff] }
 0x3a4   :  { %3184 = vmatpush3.msra.mxu0 %v2375_v12 }
 0x43b   :  { %v2129_v29 = vpop.f32.mrf.mxu0  ;;  %v2202_v9 = vpop.f32.mrf.mxu1 }
 0x43c   :  { %v2203_v37 = vadd.f32 %v2202_v9, %v2129_v29 }
 0x43d   :  { %v3119_v58 = vpop.f32.mrf.mxu0  ;;  %v3130_v50 = vpop.f32.mrf.mxu1 }
 0x444   :  { %v2282_v23 = vpop.f32.mrf.mxu0  ;;  %v2363_v45 = vpop.f32.mrf.mxu1 }
 0x445   :  { %v2286_v7 = vadd.f32 %v2282_v23, %v2203_v37 }
 0x446   :  { %v3141_v43 = vpop.f32.mrf.mxu0  ;;  %v3152_v35 = vpop.f32.mrf.mxu1 }
 0x447   :  { %v2367_v28 = vadd.f32 %v2363_v45, %v2286_v7 }
 0x449   :  { %v2373_v2 = vadd.f32 %v2592_v1, %v2367_v28 }
 0x44b   :  { %v2374_v42 = vmax.f32 %v2373_v2, 0.0 }
 0x44d   :  { %3186 = vmatmul.mubr.f32.vlgmr.msra.gmra.mxu0 %v2374_v42 }
 0x50d   :  { %v2462_v17 = vpop.f32.mrf.mxu0 }
 0x50e   :  { %v2463_v30 = vadd.f32 %v2593_v18, %v2462_v17 }
 0x50f   :  { %v3187_v46 = vpop.f32.mrf.mxu0 }
 0x510   :  { %2466 = vst [vmem:[#allocation3] sm:$0x3] %v2463_v30 }
 0x511   :  { %3217 = shalt.err (!%p3214_p4)
}
 0x512   :  { %2476 = dma.vmem_to_hbm [thread:$0]  %s2474_s9, 32, %s4679_s8, [#allocation4]  }
 0x513   :  { %3226 = dma.done.wait [#allocation4], 32  }
 0x514   :  { %3227 = vsyncadd [#allocation4], 4294967264 }
 0x515   :  { %2480 = vsyncpa [#allocation4], 1 }

</bundles_post_ra>
